<compile_context>
chip_gen: v5e
topology: v5e:2x2
jax: 0.10.0
libtpu: 0.0.40
codegen_flags: <defaults>
</compile_context>

<pallas_src>
import functools

import jax
import jax.numpy as jnp
from jax import lax
from jax.experimental import pallas as pl
from jax.experimental.pallas import tpu as pltpu

# ---- "Config" values implied by the module ----
VOCAB_SIZE = 20
EMBEDDING_DIM = 32
HIDDEN_SIZE = 32            # total bidirectional hidden
H = HIDDEN_SIZE // 2        # per-direction hidden = 16
OUTPUT_DIM = 1
INITRANGE = 0.1
NUM_LAYERS = 2
BATCH = 2
SEQ = 8
LN_EPS = 1e-5

# ---- packed-parameter slab layout (one f32 (TOTAL_ROWS, 128) array) ----
NUM_COLS = 128
VOCAB_PAD = 24                                  # 22 real rows, padded to 24
ROW_LN_G = 0                                    # (1, E)
ROW_LN_B = 1                                    # (1, E)
ROW_BIH0 = 2                                    # (1, 6H)  b_ih (+ b_hh for r,z)
ROW_BHHN0 = 3                                   # (1, 2H)  b_hh for n gate
ROW_BIH1 = 4
ROW_BHHN1 = 5
ROW_OW = 6                                      # (1, 2H)  output weight (row vec)
ROW_OB = 7                                      # (1, 1)   output bias
ROW_WIH0 = 8                                    # (2E,  6H)
ROW_WHH0 = ROW_WIH0 + 2 * EMBEDDING_DIM         # 72  (2H, 6H)
ROW_WIH1 = ROW_WHH0 + 2 * H                     # 104 (2*2H, 6H)
ROW_WHH1 = ROW_WIH1 + 2 * HIDDEN_SIZE           # 168 (2H, 6H)
ROW_EMB = ROW_WHH1 + 2 * H                      # 200 (VOCAB_PAD, E)
TOTAL_ROWS = ROW_EMB + VOCAB_PAD                # 224


def _full_spec(shape):
    # whole-array block, grid of size 1
    return pl.BlockSpec(shape, lambda i: (0,) * len(shape))


# ---------------- in-kernel bidirectional GRU layer ----------------
def _bi_gru_layer(x_flat, wih, whh, bih, bhhn, T, B):
    """One bidirectional GRU layer, fwd+bwd fused in a single unrolled loop.

    x_flat : (T*B, Din) f32, time-major flattened (row = t*B + b)
    wih    : (2*Din, 128) bf16, gate-major cols [r_f,r_b,z_f,z_b,n_f,n_b],
             rows 0:Din -> fwd (reads x_t), rows Din:2Din -> bwd (reads x_{T-1-t})
    whh    : (2H, 128) bf16, same column order, block-diagonal per direction
    bih    : (1, 128) f32  (b_ih + b_hh for r,z gates; b_ih only for n)
    bhhn   : (1, 2H) f32   (b_hh for n gate, [fwd | bwd])
    returns (T*B, 2H) f32, row (t*B+b) = [h_fwd_t | h_bwd_t]  (torch concat order)
    """
    # Pair x_t with x_{T-1-t} so the bwd direction's time reversal is folded
    # into the single hoisted input projection (off the serial path).
    x_rev = jnp.concatenate(
        [x_flat[(T - 1 - t) * B:(T - t) * B, :] for t in range(T)], axis=0)
    x_pair = jnp.concatenate([x_flat, x_rev], axis=-1)                 # (T*B, 2Din)
    xp = jnp.dot(x_pair.astype(jnp.bfloat16), wih,
                 preferred_element_type=jnp.float32) + bih             # (T*B, 128)

    h = jnp.zeros((B, 2 * H), jnp.float32)                             # [h_f | h_b]
    hs = [None] * T
    for i in range(T):                            # T=8 static -> fully unrolled
        xg = xp[i * B:(i + 1) * B, :]                                  # (B, 128)
        hg = jnp.dot(h.astype(jnp.bfloat16), whh,
                     preferred_element_type=jnp.float32)               # (B, 128)
        rz = jax.nn.sigmoid(xg[:, 0:4 * H] + hg[:, 0:4 * H])           # r&z both dirs
        r = rz[:, 0:2 * H]
        z = rz[:, 2 * H:4 * H]
        n = jnp.tanh(xg[:, 4 * H:6 * H] + r * (hg[:, 4 * H:6 * H] + bhhn))
        h = (1.0 - z) * n + z * h                                      # no concat needed
        hs[i] = h
    # assemble time-major flat output: fwd part at step t, bwd part at step T-1-t
    y_rows = [jnp.concatenate([hs[t][:, 0:H], hs[T - 1 - t][:, H:]], axis=-1)
              for t in range(T)]
    return jnp.concatenate(y_rows, axis=0)                             # (T*B, 2H)


# ---------------- fused forward kernel ----------------
def _fused_kernel(slab_ref, ids_ref, w_ref, o_ref, *, seq_len, batch):
    T, B = seq_len, batch
    E = EMBEDDING_DIM

    def rows(r, n=1):
        return slab_ref[r:r + n, :]                                    # (n, 128) f32

    # --- parameter views from the packed slab (single DMA, static slices) ---
    gamma = rows(ROW_LN_G)[:, 0:E]
    beta = rows(ROW_LN_B)[:, 0:E]
    bih0 = rows(ROW_BIH0)
    bhhn0 = rows(ROW_BHHN0)[:, 0:2 * H]
    bih1 = rows(ROW_BIH1)
    bhhn1 = rows(ROW_BHHN1)[:, 0:2 * H]
    ow = rows(ROW_OW)[:, 0:HIDDEN_SIZE]
    ob = rows(ROW_OB)[:, 0:1]
    wih0 = rows(ROW_WIH0, 2 * E).astype(jnp.bfloat16)
    whh0 = rows(ROW_WHH0, 2 * H).astype(jnp.bfloat16)
    wih1 = rows(ROW_WIH1, 2 * HIDDEN_SIZE).astype(jnp.bfloat16)
    whh1 = rows(ROW_WHH1, 2 * H).astype(jnp.bfloat16)
    tbl = rows(ROW_EMB, VOCAB_PAD)[:, 0:E]                             # (24, E)

    # --- in-kernel embedding lookup via one-hot matmul ---
    ids = ids_ref[...]                                                 # (T*B, 1) int32
    iota = lax.broadcasted_iota(jnp.int32, (T * B, VOCAB_PAD), 1)
    onehot = (iota == ids).astype(jnp.float32)                         # (T*B, 24)
    x = jnp.dot(onehot, tbl, preferred_element_type=jnp.float32)       # (T*B, E)

    # --- LayerNorm (dropout is identity at inference) ---
    mu = jnp.mean(x, axis=-1, keepdims=True)
    var = jnp.mean((x - mu) ** 2, axis=-1, keepdims=True)
    x = (x - mu) * lax.rsqrt(var + LN_EPS) * gamma + beta

    # --- 2-layer bidirectional GRU, activations stay resident ---
    y = _bi_gru_layer(x, wih0, whh0, bih0, bhhn0, T, B)
    y = _bi_gru_layer(y, wih1, whh1, bih1, bhhn1, T, B)

    # --- masked average (weights pre-normalized) + Linear + sigmoid head ---
    wy = y * w_ref[...]                                                # (T*B, 2H)
    avg = wy[0:B, :]
    for t in range(1, T):
        avg = avg + wy[t * B:(t + 1) * B, :]                           # (B, 2H)
    logits = jnp.sum(avg * ow, axis=-1, keepdims=True) + ob            # (B, 1)
    o_ref[...] = jax.nn.sigmoid(logits).astype(o_ref.dtype)


# ---------------- one-time parameter fusion (PyTorch layout -> packed slab) ----------------
def _gru_layer_blocks(fwd, bwd, din):
    """Gate-major fused blocks for one bidirectional layer.

    Column order (width 6H): [r_f, r_b, z_f, z_b, n_f, n_b].
    wih rows: [fwd input block (din) ; bwd input block (din)]
    whh rows: [h_f (H) ; h_b (H)]   (block-diagonal per direction)
    """
    w_ih_f, w_hh_f, b_ih_f, b_hh_f = fwd
    w_ih_b, w_hh_b, b_ih_b, b_hh_b = bwd
    wih = jnp.zeros((2 * din, 6 * H), jnp.float32)
    whh = jnp.zeros((2 * H, 6 * H), jnp.float32)
    bih = jnp.zeros((6 * H,), jnp.float32)
    for g in range(3):                     # gate order r, z, n (PyTorch)
        cf = slice(2 * g * H, (2 * g + 1) * H)
        cb = slice((2 * g + 1) * H, (2 * g + 2) * H)
        rg = slice(g * H, (g + 1) * H)
        wih = wih.at[:din, cf].set(jnp.transpose(w_ih_f[rg, :]))
        wih = wih.at[din:, cb].set(jnp.transpose(w_ih_b[rg, :]))
        whh = whh.at[:H, cf].set(jnp.transpose(w_hh_f[rg, :]))
        whh = whh.at[H:, cb].set(jnp.transpose(w_hh_b[rg, :]))
        bf = b_ih_f[rg] + (b_hh_f[rg] if g < 2 else 0.0)   # fold b_hh for r,z
        bb = b_ih_b[rg] + (b_hh_b[rg] if g < 2 else 0.0)
        bih = bih.at[cf].set(bf)
        bih = bih.at[cb].set(bb)
    bhhn = jnp.concatenate([b_hh_f[2 * H:], b_hh_b[2 * H:]])            # (2H,)
    return wih, whh, bih, bhhn


def prepare_params(raw):
    """Pack every parameter into one (TOTAL_ROWS, 128) f32 slab (single DMA)."""
    slab = jnp.zeros((TOTAL_ROWS, NUM_COLS), jnp.float32)
    slab = slab.at[ROW_LN_G, :EMBEDDING_DIM].set(raw["ln_gamma"])
    slab = slab.at[ROW_LN_B, :EMBEDDING_DIM].set(raw["ln_beta"])

    wih0, whh0, bih0, bhhn0 = _gru_layer_blocks(
        raw["gru_l0_fwd"], raw["gru_l0_bwd"], EMBEDDING_DIM)
    wih1, whh1, bih1, bhhn1 = _gru_layer_blocks(
        raw["gru_l1_fwd"], raw["gru_l1_bwd"], HIDDEN_SIZE)

    slab = slab.at[ROW_BIH0, :6 * H].set(bih0)
    slab = slab.at[ROW_BHHN0, :2 * H].set(bhhn0)
    slab = slab.at[ROW_BIH1, :6 * H].set(bih1)
    slab = slab.at[ROW_BHHN1, :2 * H].set(bhhn1)
    slab = slab.at[ROW_OW, :HIDDEN_SIZE].set(raw["out_w"][0])           # (out, in) -> row vec
    slab = slab.at[ROW_OB, 0].set(raw["out_b"][0])
    slab = slab.at[ROW_WIH0:ROW_WIH0 + 2 * EMBEDDING_DIM, :6 * H].set(wih0)
    slab = slab.at[ROW_WHH0:ROW_WHH0 + 2 * H, :6 * H].set(whh0)
    slab = slab.at[ROW_WIH1:ROW_WIH1 + 2 * HIDDEN_SIZE, :6 * H].set(wih1)
    slab = slab.at[ROW_WHH1:ROW_WHH1 + 2 * H, :6 * H].set(whh1)
    slab = slab.at[ROW_EMB:ROW_EMB + VOCAB_SIZE + 2, :EMBEDDING_DIM].set(raw["embedding"])
    return slab


# ---------------- full forward ----------------
@jax.jit
def custom_average_model_forward(param_slab, inputs, mask):
    B, T = inputs.shape
    # tiny scalar glue only: time-major token ids + pre-normalized mask weights
    ids_tm = jnp.transpose(inputs).reshape(T * B, 1).astype(jnp.int32)
    w = mask.astype(jnp.float32) / jnp.sum(mask.astype(jnp.float32), axis=-1, keepdims=True)
    w_tm = jnp.transpose(w).reshape(T * B, 1)        # NaN for all-zero rows (matches torch)

    kern = functools.partial(_fused_kernel, seq_len=T, batch=B)
    out = pl.pallas_call(
        kern,
        out_shape=jax.ShapeDtypeStruct((B, OUTPUT_DIM), jnp.float32),
        grid=(1,),
        in_specs=[
            _full_spec((TOTAL_ROWS, NUM_COLS)),       # packed parameter slab (1 DMA)
            _full_spec((T * B, 1)),                   # token ids (time-major)
            _full_spec((T * B, 1)),                   # normalized mask weights
        ],
        out_specs=_full_spec((B, OUTPUT_DIM)),
        compiler_params=pltpu.CompilerParams(dimension_semantics=("arbitrary",)),
    )(param_slab, ids_tm, w_tm)
    if OUTPUT_DIM == 1:                               # torch .squeeze(-1)
        out = jnp.squeeze(out, axis=-1)
    return out


# ---------------- deterministic parameter init (mirrors module __init__) ----------------
def init_params(key):
    ks = iter(jax.random.split(key, 32))
    p = {}
    # NB: torch init_weights uniform_ overwrites the padding row too, so we do
    # not re-zero row 0 (forward semantics are a plain lookup either way).
    p["embedding"] = jax.random.uniform(
        next(ks), (VOCAB_SIZE + 2, EMBEDDING_DIM), jnp.float32, -INITRANGE, INITRANGE)
    p["ln_gamma"] = jnp.ones((EMBEDDING_DIM,), jnp.float32)
    p["ln_beta"] = jnp.zeros((EMBEDDING_DIM,), jnp.float32)
    k_gru = 1.0 / (H ** 0.5)
    for layer in range(NUM_LAYERS):
        din = EMBEDDING_DIM if layer == 0 else HIDDEN_SIZE
        for d in ("fwd", "bwd"):
            w_ih = jax.random.uniform(next(ks), (3 * H, din), jnp.float32, -k_gru, k_gru)
            w_hh = jax.random.uniform(next(ks), (3 * H, H), jnp.float32, -k_gru, k_gru)
            b_ih = jax.random.uniform(next(ks), (3 * H,), jnp.float32, -k_gru, k_gru)
            b_hh = jax.random.uniform(next(ks), (3 * H,), jnp.float32, -k_gru, k_gru)
            p[f"gru_l{layer}_{d}"] = (w_ih, w_hh, b_ih, b_hh)
    p["out_w"] = jax.random.uniform(
        next(ks), (OUTPUT_DIM, HIDDEN_SIZE), jnp.float32, -INITRANGE, INITRANGE)
    p["out_b"] = jnp.zeros((OUTPUT_DIM,), jnp.float32)
    return p


if __name__ == "__main__":
    key = jax.random.PRNGKey(0)
    raw_params = init_params(key)
    param_slab = prepare_params(raw_params)   # one-time layout fusion, not per-forward

    # deterministic example inputs: (B, T) token ids with padding + matching mask
    lengths = jnp.array([SEQ, SEQ - 3])
    pos = jnp.arange(SEQ)[None, :]
    mask = (pos < lengths[:, None]).astype(jnp.float32)        # (B, T)
    tok_key = jax.random.fold_in(key, 100)
    tokens = jax.random.randint(tok_key, (BATCH, SEQ), 1, VOCAB_SIZE + 2)
    tokens = jnp.where(mask > 0, tokens, 0).astype(jnp.int32)  # (B, T)

    out = custom_average_model_forward(param_slab, tokens, mask)
    out = jax.block_until_ready(out)
    assert out.shape == (BATCH,)
    assert bool(jnp.all(jnp.isfinite(out)))
    print("KERNEL_OK")
</pallas_src>

<mosaic_0001>
module attributes {stable_mosaic.version = 11 : i64} {
  func.func @_fused_kernel(%arg0: i32, %arg1: memref<224x128xf32, #tpu.memory_space<vmem>>, %arg2: memref<16x1xi32, #tpu.memory_space<vmem>>, %arg3: memref<16x1xf32, #tpu.memory_space<vmem>>, %arg4: memref<2x1xf32, #tpu.memory_space<vmem>>) attributes {dimension_semantics = [#tpu.dimension_semantics<arbitrary>], iteration_bounds = array<i64: 1>, scalar_prefetch = 0 : i64, scratch_operands = 0 : i64, tpu.core_type = #tpu.core_type<tc>, window_params = [{pipeline_mode = #tpu.pipeline_mode<synchronous>, transform_indices = @transform_0, window_bounds = array<i64: 224, 128>}, {pipeline_mode = #tpu.pipeline_mode<synchronous>, transform_indices = @transform_1, window_bounds = array<i64: 16, 1>}, {pipeline_mode = #tpu.pipeline_mode<synchronous>, transform_indices = @transform_2, window_bounds = array<i64: 16, 1>}, {pipeline_mode = #tpu.pipeline_mode<synchronous>, transform_indices = @transform_3, window_bounds = array<i64: 2, 1>}]} {
    %c0 = arith.constant 0 : index
    %c0_0 = arith.constant 0 : index
    %0 = vector.load %arg1[%c0, %c0_0] : memref<224x128xf32, #tpu.memory_space<vmem>>, vector<1x128xf32>
    %1 = vector.extract_strided_slice %0 {offsets = [0, 0], sizes = [1, 32], strides = [1, 1]} : vector<1x128xf32> to vector<1x32xf32>
    %c1 = arith.constant 1 : index
    %c0_1 = arith.constant 0 : index
    %2 = vector.load %arg1[%c1, %c0_1] : memref<224x128xf32, #tpu.memory_space<vmem>>, vector<1x128xf32>
    %3 = vector.extract_strided_slice %2 {offsets = [0, 0], sizes = [1, 32], strides = [1, 1]} : vector<1x128xf32> to vector<1x32xf32>
    %c2 = arith.constant 2 : index
    %c0_2 = arith.constant 0 : index
    %4 = vector.load %arg1[%c2, %c0_2] : memref<224x128xf32, #tpu.memory_space<vmem>>, vector<1x128xf32>
    %c3 = arith.constant 3 : index
    %c0_3 = arith.constant 0 : index
    %5 = vector.load %arg1[%c3, %c0_3] : memref<224x128xf32, #tpu.memory_space<vmem>>, vector<1x128xf32>
    %6 = vector.extract_strided_slice %5 {offsets = [0, 0], sizes = [1, 32], strides = [1, 1]} : vector<1x128xf32> to vector<1x32xf32>
    %c4 = arith.constant 4 : index
    %c0_4 = arith.constant 0 : index
    %7 = vector.load %arg1[%c4, %c0_4] : memref<224x128xf32, #tpu.memory_space<vmem>>, vector<1x128xf32>
    %c5 = arith.constant 5 : index
    %c0_5 = arith.constant 0 : index
    %8 = vector.load %arg1[%c5, %c0_5] : memref<224x128xf32, #tpu.memory_space<vmem>>, vector<1x128xf32>
    %9 = vector.extract_strided_slice %8 {offsets = [0, 0], sizes = [1, 32], strides = [1, 1]} : vector<1x128xf32> to vector<1x32xf32>
    %c6 = arith.constant 6 : index
    %c0_6 = arith.constant 0 : index
    %10 = vector.load %arg1[%c6, %c0_6] : memref<224x128xf32, #tpu.memory_space<vmem>>, vector<1x128xf32>
    %11 = vector.extract_strided_slice %10 {offsets = [0, 0], sizes = [1, 32], strides = [1, 1]} : vector<1x128xf32> to vector<1x32xf32>
    %c7 = arith.constant 7 : index
    %c0_7 = arith.constant 0 : index
    %12 = vector.load %arg1[%c7, %c0_7] : memref<224x128xf32, #tpu.memory_space<vmem>>, vector<1x128xf32>
    %13 = vector.extract_strided_slice %12 {offsets = [0, 0], sizes = [1, 1], strides = [1, 1]} : vector<1x128xf32> to vector<1x1xf32>
    %c8 = arith.constant 8 : index
    %c0_8 = arith.constant 0 : index
    %14 = vector.load %arg1[%c8, %c0_8] : memref<224x128xf32, #tpu.memory_space<vmem>>, vector<64x128xf32>
    %15 = arith.truncf %14 : vector<64x128xf32> to vector<64x128xbf16>
    %c72 = arith.constant 72 : index
    %c0_9 = arith.constant 0 : index
    %16 = vector.load %arg1[%c72, %c0_9] : memref<224x128xf32, #tpu.memory_space<vmem>>, vector<32x128xf32>
    %17 = arith.truncf %16 : vector<32x128xf32> to vector<32x128xbf16>
    %c104 = arith.constant 104 : index
    %c0_10 = arith.constant 0 : index
    %18 = vector.load %arg1[%c104, %c0_10] : memref<224x128xf32, #tpu.memory_space<vmem>>, vector<64x128xf32>
    %19 = arith.truncf %18 : vector<64x128xf32> to vector<64x128xbf16>
    %c168 = arith.constant 168 : index
    %c0_11 = arith.constant 0 : index
    %20 = vector.load %arg1[%c168, %c0_11] : memref<224x128xf32, #tpu.memory_space<vmem>>, vector<32x128xf32>
    %21 = arith.truncf %20 : vector<32x128xf32> to vector<32x128xbf16>
    %c200 = arith.constant 200 : index
    %c0_12 = arith.constant 0 : index
    %22 = vector.load %arg1[%c200, %c0_12] : memref<224x128xf32, #tpu.memory_space<vmem>>, vector<24x128xf32>
    %23 = vector.extract_strided_slice %22 {offsets = [0, 0], sizes = [24, 32], strides = [1, 1]} : vector<24x128xf32> to vector<24x32xf32>
    %c0_13 = arith.constant 0 : index
    %c0_14 = arith.constant 0 : index
    %24 = vector.load %arg2[%c0_13, %c0_14] : memref<16x1xi32, #tpu.memory_space<vmem>>, vector<16x1xi32>
    %25 = tpu.iota {dimensions = array<i32: 1>} : vector<16x24xi32>
    %26 = vector.broadcast %24 : vector<16x1xi32> to vector<16x24xi32>
    %27 = arith.cmpi eq, %25, %26 : vector<16x24xi32>
    %28 = arith.extui %27 : vector<16x24xi1> to vector<16x24xi32>
    %29 = arith.sitofp %28 : vector<16x24xi32> to vector<16x24xf32>
    %cst = arith.constant dense<0.000000e+00> : vector<16x32xf32>
    %30 = tpu.matmul %29, %23, %cst {dimension_numbers = #tpu.dot_dimension_numbers<[1], [0], [0], [1], [0, 0, 1, 1], [], []>} : vector<16x24xf32>, vector<24x32xf32>, vector<16x32xf32> -> vector<16x32xf32>
    %cst_15 = arith.constant dense<0.000000e+00> : vector<16xf32>
    %31 = vector.multi_reduction <add>, %30, %cst_15 [1] : vector<16x32xf32> to vector<16xf32>
    %32 = vector.shape_cast %31 : vector<16xf32> to vector<16x1xf32>
    %cst_16 = arith.constant 3.200000e+01 : f32
    %33 = vector.broadcast %cst_16 : f32 to vector<16x1xf32>
    %34 = arith.divf %32, %33 : vector<16x1xf32>
    %35 = vector.broadcast %34 : vector<16x1xf32> to vector<16x32xf32>
    %36 = arith.subf %30, %35 : vector<16x32xf32>
    %37 = arith.mulf %36, %36 : vector<16x32xf32>
    %cst_17 = arith.constant dense<0.000000e+00> : vector<16xf32>
    %38 = vector.multi_reduction <add>, %37, %cst_17 [1] : vector<16x32xf32> to vector<16xf32>
    %39 = vector.shape_cast %38 : vector<16xf32> to vector<16x1xf32>
    %cst_18 = arith.constant 3.200000e+01 : f32
    %40 = vector.broadcast %cst_18 : f32 to vector<16x1xf32>
    %41 = arith.divf %39, %40 : vector<16x1xf32>
    %42 = vector.broadcast %34 : vector<16x1xf32> to vector<16x32xf32>
    %43 = arith.subf %30, %42 : vector<16x32xf32>
    %cst_19 = arith.constant 9.99999974E-6 : f32
    %44 = vector.broadcast %cst_19 : f32 to vector<16x1xf32>
    %45 = arith.addf %41, %44 : vector<16x1xf32>
    %46 = math.rsqrt %45 : vector<16x1xf32>
    %47 = vector.broadcast %46 : vector<16x1xf32> to vector<16x32xf32>
    %48 = arith.mulf %43, %47 : vector<16x32xf32>
    %49 = vector.broadcast %1 : vector<1x32xf32> to vector<16x32xf32>
    %50 = arith.mulf %48, %49 : vector<16x32xf32>
    %51 = vector.broadcast %3 : vector<1x32xf32> to vector<16x32xf32>
    %52 = arith.addf %50, %51 : vector<16x32xf32>
    %53 = vector.extract_strided_slice %52 {offsets = [14, 0], sizes = [2, 32], strides = [1, 1]} : vector<16x32xf32> to vector<2x32xf32>
    %54 = vector.extract_strided_slice %52 {offsets = [12, 0], sizes = [2, 32], strides = [1, 1]} : vector<16x32xf32> to vector<2x32xf32>
    %55 = vector.extract_strided_slice %52 {offsets = [10, 0], sizes = [2, 32], strides = [1, 1]} : vector<16x32xf32> to vector<2x32xf32>
    %56 = vector.extract_strided_slice %52 {offsets = [8, 0], sizes = [2, 32], strides = [1, 1]} : vector<16x32xf32> to vector<2x32xf32>
    %57 = vector.extract_strided_slice %52 {offsets = [6, 0], sizes = [2, 32], strides = [1, 1]} : vector<16x32xf32> to vector<2x32xf32>
    %58 = vector.extract_strided_slice %52 {offsets = [4, 0], sizes = [2, 32], strides = [1, 1]} : vector<16x32xf32> to vector<2x32xf32>
    %59 = vector.extract_strided_slice %52 {offsets = [2, 0], sizes = [2, 32], strides = [1, 1]} : vector<16x32xf32> to vector<2x32xf32>
    %60 = vector.extract_strided_slice %52 {offsets = [0, 0], sizes = [2, 32], strides = [1, 1]} : vector<16x32xf32> to vector<2x32xf32>
    %61 = tpu.concatenate %53, %54, %55, %56, %57, %58, %59, %60 in 0 : vector<2x32xf32>, vector<2x32xf32>, vector<2x32xf32>, vector<2x32xf32>, vector<2x32xf32>, vector<2x32xf32>, vector<2x32xf32>, vector<2x32xf32> -> vector<16x32xf32>
    %62 = tpu.concatenate %52, %61 in 1 : vector<16x32xf32>, vector<16x32xf32> -> vector<16x64xf32>
    %63 = arith.truncf %62 : vector<16x64xf32> to vector<16x64xbf16>
    %cst_20 = arith.constant dense<0.000000e+00> : vector<16x128xf32>
    %64 = tpu.matmul %63, %15, %cst_20 {dimension_numbers = #tpu.dot_dimension_numbers<[1], [0], [0], [1], [0, 0, 1, 1], [], []>} : vector<16x64xbf16>, vector<64x128xbf16>, vector<16x128xf32> -> vector<16x128xf32>
    %65 = vector.broadcast %4 : vector<1x128xf32> to vector<16x128xf32>
    %66 = arith.addf %64, %65 : vector<16x128xf32>
    %cst_21 = arith.constant 0.000000e+00 : f32
    %67 = vector.broadcast %cst_21 : f32 to vector<2x32xf32>
    %68 = vector.extract_strided_slice %66 {offsets = [0, 0], sizes = [2, 128], strides = [1, 1]} : vector<16x128xf32> to vector<2x128xf32>
    %69 = arith.truncf %67 : vector<2x32xf32> to vector<2x32xbf16>
    %cst_22 = arith.constant dense<0.000000e+00> : vector<2x128xf32>
    %70 = tpu.matmul %69, %17, %cst_22 {dimension_numbers = #tpu.dot_dimension_numbers<[1], [0], [0], [1], [0, 0, 1, 1], [], []>} : vector<2x32xbf16>, vector<32x128xbf16>, vector<2x128xf32> -> vector<2x128xf32>
    %71 = vector.extract_strided_slice %68 {offsets = [0, 0], sizes = [2, 64], strides = [1, 1]} : vector<2x128xf32> to vector<2x64xf32>
    %72 = vector.extract_strided_slice %70 {offsets = [0, 0], sizes = [2, 64], strides = [1, 1]} : vector<2x128xf32> to vector<2x64xf32>
    %73 = arith.addf %71, %72 : vector<2x64xf32>
    %74 = arith.negf %73 : vector<2x64xf32>
    %75 = math.exp %74 : vector<2x64xf32>
    %cst_23 = arith.constant 1.000000e+00 : f32
    %76 = vector.broadcast %cst_23 : f32 to vector<2x64xf32>
    %77 = arith.addf %76, %75 : vector<2x64xf32>
    %78 = arith.divf %76, %77 : vector<2x64xf32>
    %79 = vector.extract_strided_slice %78 {offsets = [0, 0], sizes = [2, 32], strides = [1, 1]} : vector<2x64xf32> to vector<2x32xf32>
    %80 = vector.extract_strided_slice %78 {offsets = [0, 32], sizes = [2, 32], strides = [1, 1]} : vector<2x64xf32> to vector<2x32xf32>
    %81 = vector.extract_strided_slice %68 {offsets = [0, 64], sizes = [2, 32], strides = [1, 1]} : vector<2x128xf32> to vector<2x32xf32>
    %82 = vector.extract_strided_slice %70 {offsets = [0, 64], sizes = [2, 32], strides = [1, 1]} : vector<2x128xf32> to vector<2x32xf32>
    %83 = vector.broadcast %6 : vector<1x32xf32> to vector<2x32xf32>
    %84 = arith.addf %82, %83 : vector<2x32xf32>
    %85 = arith.mulf %79, %84 : vector<2x32xf32>
    %86 = arith.addf %81, %85 : vector<2x32xf32>
    %87 = math.tanh %86 : vector<2x32xf32>
    %cst_24 = arith.constant 1.000000e+00 : f32
    %88 = vector.broadcast %cst_24 : f32 to vector<2x32xf32>
    %89 = arith.subf %88, %80 : vector<2x32xf32>
    %90 = arith.mulf %89, %87 : vector<2x32xf32>
    %91 = arith.mulf %80, %67 : vector<2x32xf32>
    %92 = arith.addf %90, %91 : vector<2x32xf32>
    %93 = vector.extract_strided_slice %66 {offsets = [2, 0], sizes = [2, 128], strides = [1, 1]} : vector<16x128xf32> to vector<2x128xf32>
    %94 = arith.truncf %92 : vector<2x32xf32> to vector<2x32xbf16>
    %cst_25 = arith.constant dense<0.000000e+00> : vector<2x128xf32>
    %95 = tpu.matmul %94, %17, %cst_25 {dimension_numbers = #tpu.dot_dimension_numbers<[1], [0], [0], [1], [0, 0, 1, 1], [], []>} : vector<2x32xbf16>, vector<32x128xbf16>, vector<2x128xf32> -> vector<2x128xf32>
    %96 = vector.extract_strided_slice %93 {offsets = [0, 0], sizes = [2, 64], strides = [1, 1]} : vector<2x128xf32> to vector<2x64xf32>
    %97 = vector.extract_strided_slice %95 {offsets = [0, 0], sizes = [2, 64], strides = [1, 1]} : vector<2x128xf32> to vector<2x64xf32>
    %98 = arith.addf %96, %97 : vector<2x64xf32>
    %99 = arith.negf %98 : vector<2x64xf32>
    %100 = math.exp %99 : vector<2x64xf32>
    %cst_26 = arith.constant 1.000000e+00 : f32
    %101 = vector.broadcast %cst_26 : f32 to vector<2x64xf32>
    %102 = arith.addf %101, %100 : vector<2x64xf32>
    %103 = arith.divf %101, %102 : vector<2x64xf32>
    %104 = vector.extract_strided_slice %103 {offsets = [0, 0], sizes = [2, 32], strides = [1, 1]} : vector<2x64xf32> to vector<2x32xf32>
    %105 = vector.extract_strided_slice %103 {offsets = [0, 32], sizes = [2, 32], strides = [1, 1]} : vector<2x64xf32> to vector<2x32xf32>
    %106 = vector.extract_strided_slice %93 {offsets = [0, 64], sizes = [2, 32], strides = [1, 1]} : vector<2x128xf32> to vector<2x32xf32>
    %107 = vector.extract_strided_slice %95 {offsets = [0, 64], sizes = [2, 32], strides = [1, 1]} : vector<2x128xf32> to vector<2x32xf32>
    %108 = vector.broadcast %6 : vector<1x32xf32> to vector<2x32xf32>
    %109 = arith.addf %107, %108 : vector<2x32xf32>
    %110 = arith.mulf %104, %109 : vector<2x32xf32>
    %111 = arith.addf %106, %110 : vector<2x32xf32>
    %112 = math.tanh %111 : vector<2x32xf32>
    %cst_27 = arith.constant 1.000000e+00 : f32
    %113 = vector.broadcast %cst_27 : f32 to vector<2x32xf32>
    %114 = arith.subf %113, %105 : vector<2x32xf32>
    %115 = arith.mulf %114, %112 : vector<2x32xf32>
    %116 = arith.mulf %105, %92 : vector<2x32xf32>
    %117 = arith.addf %115, %116 : vector<2x32xf32>
    %118 = vector.extract_strided_slice %66 {offsets = [4, 0], sizes = [2, 128], strides = [1, 1]} : vector<16x128xf32> to vector<2x128xf32>
    %119 = arith.truncf %117 : vector<2x32xf32> to vector<2x32xbf16>
    %cst_28 = arith.constant dense<0.000000e+00> : vector<2x128xf32>
    %120 = tpu.matmul %119, %17, %cst_28 {dimension_numbers = #tpu.dot_dimension_numbers<[1], [0], [0], [1], [0, 0, 1, 1], [], []>} : vector<2x32xbf16>, vector<32x128xbf16>, vector<2x128xf32> -> vector<2x128xf32>
    %121 = vector.extract_strided_slice %118 {offsets = [0, 0], sizes = [2, 64], strides = [1, 1]} : vector<2x128xf32> to vector<2x64xf32>
    %122 = vector.extract_strided_slice %120 {offsets = [0, 0], sizes = [2, 64], strides = [1, 1]} : vector<2x128xf32> to vector<2x64xf32>
    %123 = arith.addf %121, %122 : vector<2x64xf32>
    %124 = arith.negf %123 : vector<2x64xf32>
    %125 = math.exp %124 : vector<2x64xf32>
    %cst_29 = arith.constant 1.000000e+00 : f32
    %126 = vector.broadcast %cst_29 : f32 to vector<2x64xf32>
    %127 = arith.addf %126, %125 : vector<2x64xf32>
    %128 = arith.divf %126, %127 : vector<2x64xf32>
    %129 = vector.extract_strided_slice %128 {offsets = [0, 0], sizes = [2, 32], strides = [1, 1]} : vector<2x64xf32> to vector<2x32xf32>
    %130 = vector.extract_strided_slice %128 {offsets = [0, 32], sizes = [2, 32], strides = [1, 1]} : vector<2x64xf32> to vector<2x32xf32>
    %131 = vector.extract_strided_slice %118 {offsets = [0, 64], sizes = [2, 32], strides = [1, 1]} : vector<2x128xf32> to vector<2x32xf32>
    %132 = vector.extract_strided_slice %120 {offsets = [0, 64], sizes = [2, 32], strides = [1, 1]} : vector<2x128xf32> to vector<2x32xf32>
    %133 = vector.broadcast %6 : vector<1x32xf32> to vector<2x32xf32>
    %134 = arith.addf %132, %133 : vector<2x32xf32>
    %135 = arith.mulf %129, %134 : vector<2x32xf32>
    %136 = arith.addf %131, %135 : vector<2x32xf32>
    %137 = math.tanh %136 : vector<2x32xf32>
    %cst_30 = arith.constant 1.000000e+00 : f32
    %138 = vector.broadcast %cst_30 : f32 to vector<2x32xf32>
    %139 = arith.subf %138, %130 : vector<2x32xf32>
    %140 = arith.mulf %139, %137 : vector<2x32xf32>
    %141 = arith.mulf %130, %117 : vector<2x32xf32>
    %142 = arith.addf %140, %141 : vector<2x32xf32>
    %143 = vector.extract_strided_slice %66 {offsets = [6, 0], sizes = [2, 128], strides = [1, 1]} : vector<16x128xf32> to vector<2x128xf32>
    %144 = arith.truncf %142 : vector<2x32xf32> to vector<2x32xbf16>
    %cst_31 = arith.constant dense<0.000000e+00> : vector<2x128xf32>
    %145 = tpu.matmul %144, %17, %cst_31 {dimension_numbers = #tpu.dot_dimension_numbers<[1], [0], [0], [1], [0, 0, 1, 1], [], []>} : vector<2x32xbf16>, vector<32x128xbf16>, vector<2x128xf32> -> vector<2x128xf32>
    %146 = vector.extract_strided_slice %143 {offsets = [0, 0], sizes = [2, 64], strides = [1, 1]} : vector<2x128xf32> to vector<2x64xf32>
    %147 = vector.extract_strided_slice %145 {offsets = [0, 0], sizes = [2, 64], strides = [1, 1]} : vector<2x128xf32> to vector<2x64xf32>
    %148 = arith.addf %146, %147 : vector<2x64xf32>
    %149 = arith.negf %148 : vector<2x64xf32>
    %150 = math.exp %149 : vector<2x64xf32>
    %cst_32 = arith.constant 1.000000e+00 : f32
    %151 = vector.broadcast %cst_32 : f32 to vector<2x64xf32>
    %152 = arith.addf %151, %150 : vector<2x64xf32>
    %153 = arith.divf %151, %152 : vector<2x64xf32>
    %154 = vector.extract_strided_slice %153 {offsets = [0, 0], sizes = [2, 32], strides = [1, 1]} : vector<2x64xf32> to vector<2x32xf32>
    %155 = vector.extract_strided_slice %153 {offsets = [0, 32], sizes = [2, 32], strides = [1, 1]} : vector<2x64xf32> to vector<2x32xf32>
    %156 = vector.extract_strided_slice %143 {offsets = [0, 64], sizes = [2, 32], strides = [1, 1]} : vector<2x128xf32> to vector<2x32xf32>
    %157 = vector.extract_strided_slice %145 {offsets = [0, 64], sizes = [2, 32], strides = [1, 1]} : vector<2x128xf32> to vector<2x32xf32>
    %158 = vector.broadcast %6 : vector<1x32xf32> to vector<2x32xf32>
    %159 = arith.addf %157, %158 : vector<2x32xf32>
    %160 = arith.mulf %154, %159 : vector<2x32xf32>
    %161 = arith.addf %156, %160 : vector<2x32xf32>
    %162 = math.tanh %161 : vector<2x32xf32>
    %cst_33 = arith.constant 1.000000e+00 : f32
    %163 = vector.broadcast %cst_33 : f32 to vector<2x32xf32>
    %164 = arith.subf %163, %155 : vector<2x32xf32>
    %165 = arith.mulf %164, %162 : vector<2x32xf32>
    %166 = arith.mulf %155, %142 : vector<2x32xf32>
    %167 = arith.addf %165, %166 : vector<2x32xf32>
    %168 = vector.extract_strided_slice %66 {offsets = [8, 0], sizes = [2, 128], strides = [1, 1]} : vector<16x128xf32> to vector<2x128xf32>
    %169 = arith.truncf %167 : vector<2x32xf32> to vector<2x32xbf16>
    %cst_34 = arith.constant dense<0.000000e+00> : vector<2x128xf32>
    %170 = tpu.matmul %169, %17, %cst_34 {dimension_numbers = #tpu.dot_dimension_numbers<[1], [0], [0], [1], [0, 0, 1, 1], [], []>} : vector<2x32xbf16>, vector<32x128xbf16>, vector<2x128xf32> -> vector<2x128xf32>
    %171 = vector.extract_strided_slice %168 {offsets = [0, 0], sizes = [2, 64], strides = [1, 1]} : vector<2x128xf32> to vector<2x64xf32>
    %172 = vector.extract_strided_slice %170 {offsets = [0, 0], sizes = [2, 64], strides = [1, 1]} : vector<2x128xf32> to vector<2x64xf32>
    %173 = arith.addf %171, %172 : vector<2x64xf32>
    %174 = arith.negf %173 : vector<2x64xf32>
    %175 = math.exp %174 : vector<2x64xf32>
    %cst_35 = arith.constant 1.000000e+00 : f32
    %176 = vector.broadcast %cst_35 : f32 to vector<2x64xf32>
    %177 = arith.addf %176, %175 : vector<2x64xf32>
    %178 = arith.divf %176, %177 : vector<2x64xf32>
    %179 = vector.extract_strided_slice %178 {offsets = [0, 0], sizes = [2, 32], strides = [1, 1]} : vector<2x64xf32> to vector<2x32xf32>
    %180 = vector.extract_strided_slice %178 {offsets = [0, 32], sizes = [2, 32], strides = [1, 1]} : vector<2x64xf32> to vector<2x32xf32>
    %181 = vector.extract_strided_slice %168 {offsets = [0, 64], sizes = [2, 32], strides = [1, 1]} : vector<2x128xf32> to vector<2x32xf32>
    %182 = vector.extract_strided_slice %170 {offsets = [0, 64], sizes = [2, 32], strides = [1, 1]} : vector<2x128xf32> to vector<2x32xf32>
    %183 = vector.broadcast %6 : vector<1x32xf32> to vector<2x32xf32>
    %184 = arith.addf %182, %183 : vector<2x32xf32>
    %185 = arith.mulf %179, %184 : vector<2x32xf32>
    %186 = arith.addf %181, %185 : vector<2x32xf32>
    %187 = math.tanh %186 : vector<2x32xf32>
    %cst_36 = arith.constant 1.000000e+00 : f32
    %188 = vector.broadcast %cst_36 : f32 to vector<2x32xf32>
    %189 = arith.subf %188, %180 : vector<2x32xf32>
    %190 = arith.mulf %189, %187 : vector<2x32xf32>
    %191 = arith.mulf %180, %167 : vector<2x32xf32>
    %192 = arith.addf %190, %191 : vector<2x32xf32>
    %193 = vector.extract_strided_slice %66 {offsets = [10, 0], sizes = [2, 128], strides = [1, 1]} : vector<16x128xf32> to vector<2x128xf32>
    %194 = arith.truncf %192 : vector<2x32xf32> to vector<2x32xbf16>
    %cst_37 = arith.constant dense<0.000000e+00> : vector<2x128xf32>
    %195 = tpu.matmul %194, %17, %cst_37 {dimension_numbers = #tpu.dot_dimension_numbers<[1], [0], [0], [1], [0, 0, 1, 1], [], []>} : vector<2x32xbf16>, vector<32x128xbf16>, vector<2x128xf32> -> vector<2x128xf32>
    %196 = vector.extract_strided_slice %193 {offsets = [0, 0], sizes = [2, 64], strides = [1, 1]} : vector<2x128xf32> to vector<2x64xf32>
    %197 = vector.extract_strided_slice %195 {offsets = [0, 0], sizes = [2, 64], strides = [1, 1]} : vector<2x128xf32> to vector<2x64xf32>
    %198 = arith.addf %196, %197 : vector<2x64xf32>
    %199 = arith.negf %198 : vector<2x64xf32>
    %200 = math.exp %199 : vector<2x64xf32>
    %cst_38 = arith.constant 1.000000e+00 : f32
    %201 = vector.broadcast %cst_38 : f32 to vector<2x64xf32>
    %202 = arith.addf %201, %200 : vector<2x64xf32>
    %203 = arith.divf %201, %202 : vector<2x64xf32>
    %204 = vector.extract_strided_slice %203 {offsets = [0, 0], sizes = [2, 32], strides = [1, 1]} : vector<2x64xf32> to vector<2x32xf32>
    %205 = vector.extract_strided_slice %203 {offsets = [0, 32], sizes = [2, 32], strides = [1, 1]} : vector<2x64xf32> to vector<2x32xf32>
    %206 = vector.extract_strided_slice %193 {offsets = [0, 64], sizes = [2, 32], strides = [1, 1]} : vector<2x128xf32> to vector<2x32xf32>
    %207 = vector.extract_strided_slice %195 {offsets = [0, 64], sizes = [2, 32], strides = [1, 1]} : vector<2x128xf32> to vector<2x32xf32>
    %208 = vector.broadcast %6 : vector<1x32xf32> to vector<2x32xf32>
    %209 = arith.addf %207, %208 : vector<2x32xf32>
    %210 = arith.mulf %204, %209 : vector<2x32xf32>
    %211 = arith.addf %206, %210 : vector<2x32xf32>
    %212 = math.tanh %211 : vector<2x32xf32>
    %cst_39 = arith.constant 1.000000e+00 : f32
    %213 = vector.broadcast %cst_39 : f32 to vector<2x32xf32>
    %214 = arith.subf %213, %205 : vector<2x32xf32>
    %215 = arith.mulf %214, %212 : vector<2x32xf32>
    %216 = arith.mulf %205, %192 : vector<2x32xf32>
    %217 = arith.addf %215, %216 : vector<2x32xf32>
    %218 = vector.extract_strided_slice %66 {offsets = [12, 0], sizes = [2, 128], strides = [1, 1]} : vector<16x128xf32> to vector<2x128xf32>
    %219 = arith.truncf %217 : vector<2x32xf32> to vector<2x32xbf16>
    %cst_40 = arith.constant dense<0.000000e+00> : vector<2x128xf32>
    %220 = tpu.matmul %219, %17, %cst_40 {dimension_numbers = #tpu.dot_dimension_numbers<[1], [0], [0], [1], [0, 0, 1, 1], [], []>} : vector<2x32xbf16>, vector<32x128xbf16>, vector<2x128xf32> -> vector<2x128xf32>
    %221 = vector.extract_strided_slice %218 {offsets = [0, 0], sizes = [2, 64], strides = [1, 1]} : vector<2x128xf32> to vector<2x64xf32>
    %222 = vector.extract_strided_slice %220 {offsets = [0, 0], sizes = [2, 64], strides = [1, 1]} : vector<2x128xf32> to vector<2x64xf32>
    %223 = arith.addf %221, %222 : vector<2x64xf32>
    %224 = arith.negf %223 : vector<2x64xf32>
    %225 = math.exp %224 : vector<2x64xf32>
    %cst_41 = arith.constant 1.000000e+00 : f32
    %226 = vector.broadcast %cst_41 : f32 to vector<2x64xf32>
    %227 = arith.addf %226, %225 : vector<2x64xf32>
    %228 = arith.divf %226, %227 : vector<2x64xf32>
    %229 = vector.extract_strided_slice %228 {offsets = [0, 0], sizes = [2, 32], strides = [1, 1]} : vector<2x64xf32> to vector<2x32xf32>
    %230 = vector.extract_strided_slice %228 {offsets = [0, 32], sizes = [2, 32], strides = [1, 1]} : vector<2x64xf32> to vector<2x32xf32>
    %231 = vector.extract_strided_slice %218 {offsets = [0, 64], sizes = [2, 32], strides = [1, 1]} : vector<2x128xf32> to vector<2x32xf32>
    %232 = vector.extract_strided_slice %220 {offsets = [0, 64], sizes = [2, 32], strides = [1, 1]} : vector<2x128xf32> to vector<2x32xf32>
    %233 = vector.broadcast %6 : vector<1x32xf32> to vector<2x32xf32>
    %234 = arith.addf %232, %233 : vector<2x32xf32>
    %235 = arith.mulf %229, %234 : vector<2x32xf32>
    %236 = arith.addf %231, %235 : vector<2x32xf32>
    %237 = math.tanh %236 : vector<2x32xf32>
    %cst_42 = arith.constant 1.000000e+00 : f32
    %238 = vector.broadcast %cst_42 : f32 to vector<2x32xf32>
    %239 = arith.subf %238, %230 : vector<2x32xf32>
    %240 = arith.mulf %239, %237 : vector<2x32xf32>
    %241 = arith.mulf %230, %217 : vector<2x32xf32>
    %242 = arith.addf %240, %241 : vector<2x32xf32>
    %243 = vector.extract_strided_slice %66 {offsets = [14, 0], sizes = [2, 128], strides = [1, 1]} : vector<16x128xf32> to vector<2x128xf32>
    %244 = arith.truncf %242 : vector<2x32xf32> to vector<2x32xbf16>
    %cst_43 = arith.constant dense<0.000000e+00> : vector<2x128xf32>
    %245 = tpu.matmul %244, %17, %cst_43 {dimension_numbers = #tpu.dot_dimension_numbers<[1], [0], [0], [1], [0, 0, 1, 1], [], []>} : vector<2x32xbf16>, vector<32x128xbf16>, vector<2x128xf32> -> vector<2x128xf32>
    %246 = vector.extract_strided_slice %243 {offsets = [0, 0], sizes = [2, 64], strides = [1, 1]} : vector<2x128xf32> to vector<2x64xf32>
    %247 = vector.extract_strided_slice %245 {offsets = [0, 0], sizes = [2, 64], strides = [1, 1]} : vector<2x128xf32> to vector<2x64xf32>
    %248 = arith.addf %246, %247 : vector<2x64xf32>
    %249 = arith.negf %248 : vector<2x64xf32>
    %250 = math.exp %249 : vector<2x64xf32>
    %cst_44 = arith.constant 1.000000e+00 : f32
    %251 = vector.broadcast %cst_44 : f32 to vector<2x64xf32>
    %252 = arith.addf %251, %250 : vector<2x64xf32>
    %253 = arith.divf %251, %252 : vector<2x64xf32>
    %254 = vector.extract_strided_slice %253 {offsets = [0, 0], sizes = [2, 32], strides = [1, 1]} : vector<2x64xf32> to vector<2x32xf32>
    %255 = vector.extract_strided_slice %253 {offsets = [0, 32], sizes = [2, 32], strides = [1, 1]} : vector<2x64xf32> to vector<2x32xf32>
    %256 = vector.extract_strided_slice %243 {offsets = [0, 64], sizes = [2, 32], strides = [1, 1]} : vector<2x128xf32> to vector<2x32xf32>
    %257 = vector.extract_strided_slice %245 {offsets = [0, 64], sizes = [2, 32], strides = [1, 1]} : vector<2x128xf32> to vector<2x32xf32>
    %258 = vector.broadcast %6 : vector<1x32xf32> to vector<2x32xf32>
    %259 = arith.addf %257, %258 : vector<2x32xf32>
    %260 = arith.mulf %254, %259 : vector<2x32xf32>
    %261 = arith.addf %256, %260 : vector<2x32xf32>
    %262 = math.tanh %261 : vector<2x32xf32>
    %cst_45 = arith.constant 1.000000e+00 : f32
    %263 = vector.broadcast %cst_45 : f32 to vector<2x32xf32>
    %264 = arith.subf %263, %255 : vector<2x32xf32>
    %265 = arith.mulf %264, %262 : vector<2x32xf32>
    %266 = arith.mulf %255, %242 : vector<2x32xf32>
    %267 = arith.addf %265, %266 : vector<2x32xf32>
    %268 = vector.extract_strided_slice %92 {offsets = [0, 0], sizes = [2, 16], strides = [1, 1]} : vector<2x32xf32> to vector<2x16xf32>
    %269 = vector.extract_strided_slice %267 {offsets = [0, 16], sizes = [2, 16], strides = [1, 1]} : vector<2x32xf32> to vector<2x16xf32>
    %270 = tpu.concatenate %268, %269 in 1 : vector<2x16xf32>, vector<2x16xf32> -> vector<2x32xf32>
    %271 = vector.extract_strided_slice %117 {offsets = [0, 0], sizes = [2, 16], strides = [1, 1]} : vector<2x32xf32> to vector<2x16xf32>
    %272 = vector.extract_strided_slice %242 {offsets = [0, 16], sizes = [2, 16], strides = [1, 1]} : vector<2x32xf32> to vector<2x16xf32>
    %273 = tpu.concatenate %271, %272 in 1 : vector<2x16xf32>, vector<2x16xf32> -> vector<2x32xf32>
    %274 = vector.extract_strided_slice %142 {offsets = [0, 0], sizes = [2, 16], strides = [1, 1]} : vector<2x32xf32> to vector<2x16xf32>
    %275 = vector.extract_strided_slice %217 {offsets = [0, 16], sizes = [2, 16], strides = [1, 1]} : vector<2x32xf32> to vector<2x16xf32>
    %276 = tpu.concatenate %274, %275 in 1 : vector<2x16xf32>, vector<2x16xf32> -> vector<2x32xf32>
    %277 = vector.extract_strided_slice %167 {offsets = [0, 0], sizes = [2, 16], strides = [1, 1]} : vector<2x32xf32> to vector<2x16xf32>
    %278 = vector.extract_strided_slice %192 {offsets = [0, 16], sizes = [2, 16], strides = [1, 1]} : vector<2x32xf32> to vector<2x16xf32>
    %279 = tpu.concatenate %277, %278 in 1 : vector<2x16xf32>, vector<2x16xf32> -> vector<2x32xf32>
    %280 = vector.extract_strided_slice %192 {offsets = [0, 0], sizes = [2, 16], strides = [1, 1]} : vector<2x32xf32> to vector<2x16xf32>
    %281 = vector.extract_strided_slice %167 {offsets = [0, 16], sizes = [2, 16], strides = [1, 1]} : vector<2x32xf32> to vector<2x16xf32>
    %282 = tpu.concatenate %280, %281 in 1 : vector<2x16xf32>, vector<2x16xf32> -> vector<2x32xf32>
    %283 = vector.extract_strided_slice %217 {offsets = [0, 0], sizes = [2, 16], strides = [1, 1]} : vector<2x32xf32> to vector<2x16xf32>
    %284 = vector.extract_strided_slice %142 {offsets = [0, 16], sizes = [2, 16], strides = [1, 1]} : vector<2x32xf32> to vector<2x16xf32>
    %285 = tpu.concatenate %283, %284 in 1 : vector<2x16xf32>, vector<2x16xf32> -> vector<2x32xf32>
    %286 = vector.extract_strided_slice %242 {offsets = [0, 0], sizes = [2, 16], strides = [1, 1]} : vector<2x32xf32> to vector<2x16xf32>
    %287 = vector.extract_strided_slice %117 {offsets = [0, 16], sizes = [2, 16], strides = [1, 1]} : vector<2x32xf32> to vector<2x16xf32>
    %288 = tpu.concatenate %286, %287 in 1 : vector<2x16xf32>, vector<2x16xf32> -> vector<2x32xf32>
    %289 = vector.extract_strided_slice %267 {offsets = [0, 0], sizes = [2, 16], strides = [1, 1]} : vector<2x32xf32> to vector<2x16xf32>
    %290 = vector.extract_strided_slice %92 {offsets = [0, 16], sizes = [2, 16], strides = [1, 1]} : vector<2x32xf32> to vector<2x16xf32>
    %291 = tpu.concatenate %289, %290 in 1 : vector<2x16xf32>, vector<2x16xf32> -> vector<2x32xf32>
    %292 = tpu.concatenate %270, %273, %276, %279, %282, %285, %288, %291 in 0 : vector<2x32xf32>, vector<2x32xf32>, vector<2x32xf32>, vector<2x32xf32>, vector<2x32xf32>, vector<2x32xf32>, vector<2x32xf32>, vector<2x32xf32> -> vector<16x32xf32>
    %293 = vector.extract_strided_slice %292 {offsets = [14, 0], sizes = [2, 32], strides = [1, 1]} : vector<16x32xf32> to vector<2x32xf32>
    %294 = vector.extract_strided_slice %292 {offsets = [12, 0], sizes = [2, 32], strides = [1, 1]} : vector<16x32xf32> to vector<2x32xf32>
    %295 = vector.extract_strided_slice %292 {offsets = [10, 0], sizes = [2, 32], strides = [1, 1]} : vector<16x32xf32> to vector<2x32xf32>
    %296 = vector.extract_strided_slice %292 {offsets = [8, 0], sizes = [2, 32], strides = [1, 1]} : vector<16x32xf32> to vector<2x32xf32>
    %297 = vector.extract_strided_slice %292 {offsets = [6, 0], sizes = [2, 32], strides = [1, 1]} : vector<16x32xf32> to vector<2x32xf32>
    %298 = vector.extract_strided_slice %292 {offsets = [4, 0], sizes = [2, 32], strides = [1, 1]} : vector<16x32xf32> to vector<2x32xf32>
    %299 = vector.extract_strided_slice %292 {offsets = [2, 0], sizes = [2, 32], strides = [1, 1]} : vector<16x32xf32> to vector<2x32xf32>
    %300 = vector.extract_strided_slice %292 {offsets = [0, 0], sizes = [2, 32], strides = [1, 1]} : vector<16x32xf32> to vector<2x32xf32>
    %301 = tpu.concatenate %293, %294, %295, %296, %297, %298, %299, %300 in 0 : vector<2x32xf32>, vector<2x32xf32>, vector<2x32xf32>, vector<2x32xf32>, vector<2x32xf32>, vector<2x32xf32>, vector<2x32xf32>, vector<2x32xf32> -> vector<16x32xf32>
    %302 = tpu.concatenate %292, %301 in 1 : vector<16x32xf32>, vector<16x32xf32> -> vector<16x64xf32>
    %303 = arith.truncf %302 : vector<16x64xf32> to vector<16x64xbf16>
    %cst_46 = arith.constant dense<0.000000e+00> : vector<16x128xf32>
    %304 = tpu.matmul %303, %19, %cst_46 {dimension_numbers = #tpu.dot_dimension_numbers<[1], [0], [0], [1], [0, 0, 1, 1], [], []>} : vector<16x64xbf16>, vector<64x128xbf16>, vector<16x128xf32> -> vector<16x128xf32>
    %305 = vector.broadcast %7 : vector<1x128xf32> to vector<16x128xf32>
    %306 = arith.addf %304, %305 : vector<16x128xf32>
    %cst_47 = arith.constant 0.000000e+00 : f32
    %307 = vector.broadcast %cst_47 : f32 to vector<2x32xf32>
    %308 = vector.extract_strided_slice %306 {offsets = [0, 0], sizes = [2, 128], strides = [1, 1]} : vector<16x128xf32> to vector<2x128xf32>
    %309 = arith.truncf %307 : vector<2x32xf32> to vector<2x32xbf16>
    %cst_48 = arith.constant dense<0.000000e+00> : vector<2x128xf32>
    %310 = tpu.matmul %309, %21, %cst_48 {dimension_numbers = #tpu.dot_dimension_numbers<[1], [0], [0], [1], [0, 0, 1, 1], [], []>} : vector<2x32xbf16>, vector<32x128xbf16>, vector<2x128xf32> -> vector<2x128xf32>
    %311 = vector.extract_strided_slice %308 {offsets = [0, 0], sizes = [2, 64], strides = [1, 1]} : vector<2x128xf32> to vector<2x64xf32>
    %312 = vector.extract_strided_slice %310 {offsets = [0, 0], sizes = [2, 64], strides = [1, 1]} : vector<2x128xf32> to vector<2x64xf32>
    %313 = arith.addf %311, %312 : vector<2x64xf32>
    %314 = arith.negf %313 : vector<2x64xf32>
    %315 = math.exp %314 : vector<2x64xf32>
    %cst_49 = arith.constant 1.000000e+00 : f32
    %316 = vector.broadcast %cst_49 : f32 to vector<2x64xf32>
    %317 = arith.addf %316, %315 : vector<2x64xf32>
    %318 = arith.divf %316, %317 : vector<2x64xf32>
    %319 = vector.extract_strided_slice %318 {offsets = [0, 0], sizes = [2, 32], strides = [1, 1]} : vector<2x64xf32> to vector<2x32xf32>
    %320 = vector.extract_strided_slice %318 {offsets = [0, 32], sizes = [2, 32], strides = [1, 1]} : vector<2x64xf32> to vector<2x32xf32>
    %321 = vector.extract_strided_slice %308 {offsets = [0, 64], sizes = [2, 32], strides = [1, 1]} : vector<2x128xf32> to vector<2x32xf32>
    %322 = vector.extract_strided_slice %310 {offsets = [0, 64], sizes = [2, 32], strides = [1, 1]} : vector<2x128xf32> to vector<2x32xf32>
    %323 = vector.broadcast %9 : vector<1x32xf32> to vector<2x32xf32>
    %324 = arith.addf %322, %323 : vector<2x32xf32>
    %325 = arith.mulf %319, %324 : vector<2x32xf32>
    %326 = arith.addf %321, %325 : vector<2x32xf32>
    %327 = math.tanh %326 : vector<2x32xf32>
    %cst_50 = arith.constant 1.000000e+00 : f32
    %328 = vector.broadcast %cst_50 : f32 to vector<2x32xf32>
    %329 = arith.subf %328, %320 : vector<2x32xf32>
    %330 = arith.mulf %329, %327 : vector<2x32xf32>
    %331 = arith.mulf %320, %307 : vector<2x32xf32>
    %332 = arith.addf %330, %331 : vector<2x32xf32>
    %333 = vector.extract_strided_slice %306 {offsets = [2, 0], sizes = [2, 128], strides = [1, 1]} : vector<16x128xf32> to vector<2x128xf32>
    %334 = arith.truncf %332 : vector<2x32xf32> to vector<2x32xbf16>
    %cst_51 = arith.constant dense<0.000000e+00> : vector<2x128xf32>
    %335 = tpu.matmul %334, %21, %cst_51 {dimension_numbers = #tpu.dot_dimension_numbers<[1], [0], [0], [1], [0, 0, 1, 1], [], []>} : vector<2x32xbf16>, vector<32x128xbf16>, vector<2x128xf32> -> vector<2x128xf32>
    %336 = vector.extract_strided_slice %333 {offsets = [0, 0], sizes = [2, 64], strides = [1, 1]} : vector<2x128xf32> to vector<2x64xf32>
    %337 = vector.extract_strided_slice %335 {offsets = [0, 0], sizes = [2, 64], strides = [1, 1]} : vector<2x128xf32> to vector<2x64xf32>
    %338 = arith.addf %336, %337 : vector<2x64xf32>
    %339 = arith.negf %338 : vector<2x64xf32>
    %340 = math.exp %339 : vector<2x64xf32>
    %cst_52 = arith.constant 1.000000e+00 : f32
    %341 = vector.broadcast %cst_52 : f32 to vector<2x64xf32>
    %342 = arith.addf %341, %340 : vector<2x64xf32>
    %343 = arith.divf %341, %342 : vector<2x64xf32>
    %344 = vector.extract_strided_slice %343 {offsets = [0, 0], sizes = [2, 32], strides = [1, 1]} : vector<2x64xf32> to vector<2x32xf32>
    %345 = vector.extract_strided_slice %343 {offsets = [0, 32], sizes = [2, 32], strides = [1, 1]} : vector<2x64xf32> to vector<2x32xf32>
    %346 = vector.extract_strided_slice %333 {offsets = [0, 64], sizes = [2, 32], strides = [1, 1]} : vector<2x128xf32> to vector<2x32xf32>
    %347 = vector.extract_strided_slice %335 {offsets = [0, 64], sizes = [2, 32], strides = [1, 1]} : vector<2x128xf32> to vector<2x32xf32>
    %348 = vector.broadcast %9 : vector<1x32xf32> to vector<2x32xf32>
    %349 = arith.addf %347, %348 : vector<2x32xf32>
    %350 = arith.mulf %344, %349 : vector<2x32xf32>
    %351 = arith.addf %346, %350 : vector<2x32xf32>
    %352 = math.tanh %351 : vector<2x32xf32>
    %cst_53 = arith.constant 1.000000e+00 : f32
    %353 = vector.broadcast %cst_53 : f32 to vector<2x32xf32>
    %354 = arith.subf %353, %345 : vector<2x32xf32>
    %355 = arith.mulf %354, %352 : vector<2x32xf32>
    %356 = arith.mulf %345, %332 : vector<2x32xf32>
    %357 = arith.addf %355, %356 : vector<2x32xf32>
    %358 = vector.extract_strided_slice %306 {offsets = [4, 0], sizes = [2, 128], strides = [1, 1]} : vector<16x128xf32> to vector<2x128xf32>
    %359 = arith.truncf %357 : vector<2x32xf32> to vector<2x32xbf16>
    %cst_54 = arith.constant dense<0.000000e+00> : vector<2x128xf32>
    %360 = tpu.matmul %359, %21, %cst_54 {dimension_numbers = #tpu.dot_dimension_numbers<[1], [0], [0], [1], [0, 0, 1, 1], [], []>} : vector<2x32xbf16>, vector<32x128xbf16>, vector<2x128xf32> -> vector<2x128xf32>
    %361 = vector.extract_strided_slice %358 {offsets = [0, 0], sizes = [2, 64], strides = [1, 1]} : vector<2x128xf32> to vector<2x64xf32>
    %362 = vector.extract_strided_slice %360 {offsets = [0, 0], sizes = [2, 64], strides = [1, 1]} : vector<2x128xf32> to vector<2x64xf32>
    %363 = arith.addf %361, %362 : vector<2x64xf32>
    %364 = arith.negf %363 : vector<2x64xf32>
    %365 = math.exp %364 : vector<2x64xf32>
    %cst_55 = arith.constant 1.000000e+00 : f32
    %366 = vector.broadcast %cst_55 : f32 to vector<2x64xf32>
    %367 = arith.addf %366, %365 : vector<2x64xf32>
    %368 = arith.divf %366, %367 : vector<2x64xf32>
    %369 = vector.extract_strided_slice %368 {offsets = [0, 0], sizes = [2, 32], strides = [1, 1]} : vector<2x64xf32> to vector<2x32xf32>
    %370 = vector.extract_strided_slice %368 {offsets = [0, 32], sizes = [2, 32], strides = [1, 1]} : vector<2x64xf32> to vector<2x32xf32>
    %371 = vector.extract_strided_slice %358 {offsets = [0, 64], sizes = [2, 32], strides = [1, 1]} : vector<2x128xf32> to vector<2x32xf32>
    %372 = vector.extract_strided_slice %360 {offsets = [0, 64], sizes = [2, 32], strides = [1, 1]} : vector<2x128xf32> to vector<2x32xf32>
    %373 = vector.broadcast %9 : vector<1x32xf32> to vector<2x32xf32>
    %374 = arith.addf %372, %373 : vector<2x32xf32>
    %375 = arith.mulf %369, %374 : vector<2x32xf32>
    %376 = arith.addf %371, %375 : vector<2x32xf32>
    %377 = math.tanh %376 : vector<2x32xf32>
    %cst_56 = arith.constant 1.000000e+00 : f32
    %378 = vector.broadcast %cst_56 : f32 to vector<2x32xf32>
    %379 = arith.subf %378, %370 : vector<2x32xf32>
    %380 = arith.mulf %379, %377 : vector<2x32xf32>
    %381 = arith.mulf %370, %357 : vector<2x32xf32>
    %382 = arith.addf %380, %381 : vector<2x32xf32>
    %383 = vector.extract_strided_slice %306 {offsets = [6, 0], sizes = [2, 128], strides = [1, 1]} : vector<16x128xf32> to vector<2x128xf32>
    %384 = arith.truncf %382 : vector<2x32xf32> to vector<2x32xbf16>
    %cst_57 = arith.constant dense<0.000000e+00> : vector<2x128xf32>
    %385 = tpu.matmul %384, %21, %cst_57 {dimension_numbers = #tpu.dot_dimension_numbers<[1], [0], [0], [1], [0, 0, 1, 1], [], []>} : vector<2x32xbf16>, vector<32x128xbf16>, vector<2x128xf32> -> vector<2x128xf32>
    %386 = vector.extract_strided_slice %383 {offsets = [0, 0], sizes = [2, 64], strides = [1, 1]} : vector<2x128xf32> to vector<2x64xf32>
    %387 = vector.extract_strided_slice %385 {offsets = [0, 0], sizes = [2, 64], strides = [1, 1]} : vector<2x128xf32> to vector<2x64xf32>
    %388 = arith.addf %386, %387 : vector<2x64xf32>
    %389 = arith.negf %388 : vector<2x64xf32>
    %390 = math.exp %389 : vector<2x64xf32>
    %cst_58 = arith.constant 1.000000e+00 : f32
    %391 = vector.broadcast %cst_58 : f32 to vector<2x64xf32>
    %392 = arith.addf %391, %390 : vector<2x64xf32>
    %393 = arith.divf %391, %392 : vector<2x64xf32>
    %394 = vector.extract_strided_slice %393 {offsets = [0, 0], sizes = [2, 32], strides = [1, 1]} : vector<2x64xf32> to vector<2x32xf32>
    %395 = vector.extract_strided_slice %393 {offsets = [0, 32], sizes = [2, 32], strides = [1, 1]} : vector<2x64xf32> to vector<2x32xf32>
    %396 = vector.extract_strided_slice %383 {offsets = [0, 64], sizes = [2, 32], strides = [1, 1]} : vector<2x128xf32> to vector<2x32xf32>
    %397 = vector.extract_strided_slice %385 {offsets = [0, 64], sizes = [2, 32], strides = [1, 1]} : vector<2x128xf32> to vector<2x32xf32>
    %398 = vector.broadcast %9 : vector<1x32xf32> to vector<2x32xf32>
    %399 = arith.addf %397, %398 : vector<2x32xf32>
    %400 = arith.mulf %394, %399 : vector<2x32xf32>
    %401 = arith.addf %396, %400 : vector<2x32xf32>
    %402 = math.tanh %401 : vector<2x32xf32>
    %cst_59 = arith.constant 1.000000e+00 : f32
    %403 = vector.broadcast %cst_59 : f32 to vector<2x32xf32>
    %404 = arith.subf %403, %395 : vector<2x32xf32>
    %405 = arith.mulf %404, %402 : vector<2x32xf32>
    %406 = arith.mulf %395, %382 : vector<2x32xf32>
    %407 = arith.addf %405, %406 : vector<2x32xf32>
    %408 = vector.extract_strided_slice %306 {offsets = [8, 0], sizes = [2, 128], strides = [1, 1]} : vector<16x128xf32> to vector<2x128xf32>
    %409 = arith.truncf %407 : vector<2x32xf32> to vector<2x32xbf16>
    %cst_60 = arith.constant dense<0.000000e+00> : vector<2x128xf32>
    %410 = tpu.matmul %409, %21, %cst_60 {dimension_numbers = #tpu.dot_dimension_numbers<[1], [0], [0], [1], [0, 0, 1, 1], [], []>} : vector<2x32xbf16>, vector<32x128xbf16>, vector<2x128xf32> -> vector<2x128xf32>
    %411 = vector.extract_strided_slice %408 {offsets = [0, 0], sizes = [2, 64], strides = [1, 1]} : vector<2x128xf32> to vector<2x64xf32>
    %412 = vector.extract_strided_slice %410 {offsets = [0, 0], sizes = [2, 64], strides = [1, 1]} : vector<2x128xf32> to vector<2x64xf32>
    %413 = arith.addf %411, %412 : vector<2x64xf32>
    %414 = arith.negf %413 : vector<2x64xf32>
    %415 = math.exp %414 : vector<2x64xf32>
    %cst_61 = arith.constant 1.000000e+00 : f32
    %416 = vector.broadcast %cst_61 : f32 to vector<2x64xf32>
    %417 = arith.addf %416, %415 : vector<2x64xf32>
    %418 = arith.divf %416, %417 : vector<2x64xf32>
    %419 = vector.extract_strided_slice %418 {offsets = [0, 0], sizes = [2, 32], strides = [1, 1]} : vector<2x64xf32> to vector<2x32xf32>
    %420 = vector.extract_strided_slice %418 {offsets = [0, 32], sizes = [2, 32], strides = [1, 1]} : vector<2x64xf32> to vector<2x32xf32>
    %421 = vector.extract_strided_slice %408 {offsets = [0, 64], sizes = [2, 32], strides = [1, 1]} : vector<2x128xf32> to vector<2x32xf32>
    %422 = vector.extract_strided_slice %410 {offsets = [0, 64], sizes = [2, 32], strides = [1, 1]} : vector<2x128xf32> to vector<2x32xf32>
    %423 = vector.broadcast %9 : vector<1x32xf32> to vector<2x32xf32>
    %424 = arith.addf %422, %423 : vector<2x32xf32>
    %425 = arith.mulf %419, %424 : vector<2x32xf32>
    %426 = arith.addf %421, %425 : vector<2x32xf32>
    %427 = math.tanh %426 : vector<2x32xf32>
    %cst_62 = arith.constant 1.000000e+00 : f32
    %428 = vector.broadcast %cst_62 : f32 to vector<2x32xf32>
    %429 = arith.subf %428, %420 : vector<2x32xf32>
    %430 = arith.mulf %429, %427 : vector<2x32xf32>
    %431 = arith.mulf %420, %407 : vector<2x32xf32>
    %432 = arith.addf %430, %431 : vector<2x32xf32>
    %433 = vector.extract_strided_slice %306 {offsets = [10, 0], sizes = [2, 128], strides = [1, 1]} : vector<16x128xf32> to vector<2x128xf32>
    %434 = arith.truncf %432 : vector<2x32xf32> to vector<2x32xbf16>
    %cst_63 = arith.constant dense<0.000000e+00> : vector<2x128xf32>
    %435 = tpu.matmul %434, %21, %cst_63 {dimension_numbers = #tpu.dot_dimension_numbers<[1], [0], [0], [1], [0, 0, 1, 1], [], []>} : vector<2x32xbf16>, vector<32x128xbf16>, vector<2x128xf32> -> vector<2x128xf32>
    %436 = vector.extract_strided_slice %433 {offsets = [0, 0], sizes = [2, 64], strides = [1, 1]} : vector<2x128xf32> to vector<2x64xf32>
    %437 = vector.extract_strided_slice %435 {offsets = [0, 0], sizes = [2, 64], strides = [1, 1]} : vector<2x128xf32> to vector<2x64xf32>
    %438 = arith.addf %436, %437 : vector<2x64xf32>
    %439 = arith.negf %438 : vector<2x64xf32>
    %440 = math.exp %439 : vector<2x64xf32>
    %cst_64 = arith.constant 1.000000e+00 : f32
    %441 = vector.broadcast %cst_64 : f32 to vector<2x64xf32>
    %442 = arith.addf %441, %440 : vector<2x64xf32>
    %443 = arith.divf %441, %442 : vector<2x64xf32>
    %444 = vector.extract_strided_slice %443 {offsets = [0, 0], sizes = [2, 32], strides = [1, 1]} : vector<2x64xf32> to vector<2x32xf32>
    %445 = vector.extract_strided_slice %443 {offsets = [0, 32], sizes = [2, 32], strides = [1, 1]} : vector<2x64xf32> to vector<2x32xf32>
    %446 = vector.extract_strided_slice %433 {offsets = [0, 64], sizes = [2, 32], strides = [1, 1]} : vector<2x128xf32> to vector<2x32xf32>
    %447 = vector.extract_strided_slice %435 {offsets = [0, 64], sizes = [2, 32], strides = [1, 1]} : vector<2x128xf32> to vector<2x32xf32>
    %448 = vector.broadcast %9 : vector<1x32xf32> to vector<2x32xf32>
    %449 = arith.addf %447, %448 : vector<2x32xf32>
    %450 = arith.mulf %444, %449 : vector<2x32xf32>
    %451 = arith.addf %446, %450 : vector<2x32xf32>
    %452 = math.tanh %451 : vector<2x32xf32>
    %cst_65 = arith.constant 1.000000e+00 : f32
    %453 = vector.broadcast %cst_65 : f32 to vector<2x32xf32>
    %454 = arith.subf %453, %445 : vector<2x32xf32>
    %455 = arith.mulf %454, %452 : vector<2x32xf32>
    %456 = arith.mulf %445, %432 : vector<2x32xf32>
    %457 = arith.addf %455, %456 : vector<2x32xf32>
    %458 = vector.extract_strided_slice %306 {offsets = [12, 0], sizes = [2, 128], strides = [1, 1]} : vector<16x128xf32> to vector<2x128xf32>
    %459 = arith.truncf %457 : vector<2x32xf32> to vector<2x32xbf16>
    %cst_66 = arith.constant dense<0.000000e+00> : vector<2x128xf32>
    %460 = tpu.matmul %459, %21, %cst_66 {dimension_numbers = #tpu.dot_dimension_numbers<[1], [0], [0], [1], [0, 0, 1, 1], [], []>} : vector<2x32xbf16>, vector<32x128xbf16>, vector<2x128xf32> -> vector<2x128xf32>
    %461 = vector.extract_strided_slice %458 {offsets = [0, 0], sizes = [2, 64], strides = [1, 1]} : vector<2x128xf32> to vector<2x64xf32>
    %462 = vector.extract_strided_slice %460 {offsets = [0, 0], sizes = [2, 64], strides = [1, 1]} : vector<2x128xf32> to vector<2x64xf32>
    %463 = arith.addf %461, %462 : vector<2x64xf32>
    %464 = arith.negf %463 : vector<2x64xf32>
    %465 = math.exp %464 : vector<2x64xf32>
    %cst_67 = arith.constant 1.000000e+00 : f32
    %466 = vector.broadcast %cst_67 : f32 to vector<2x64xf32>
    %467 = arith.addf %466, %465 : vector<2x64xf32>
    %468 = arith.divf %466, %467 : vector<2x64xf32>
    %469 = vector.extract_strided_slice %468 {offsets = [0, 0], sizes = [2, 32], strides = [1, 1]} : vector<2x64xf32> to vector<2x32xf32>
    %470 = vector.extract_strided_slice %468 {offsets = [0, 32], sizes = [2, 32], strides = [1, 1]} : vector<2x64xf32> to vector<2x32xf32>
    %471 = vector.extract_strided_slice %458 {offsets = [0, 64], sizes = [2, 32], strides = [1, 1]} : vector<2x128xf32> to vector<2x32xf32>
    %472 = vector.extract_strided_slice %460 {offsets = [0, 64], sizes = [2, 32], strides = [1, 1]} : vector<2x128xf32> to vector<2x32xf32>
    %473 = vector.broadcast %9 : vector<1x32xf32> to vector<2x32xf32>
    %474 = arith.addf %472, %473 : vector<2x32xf32>
    %475 = arith.mulf %469, %474 : vector<2x32xf32>
    %476 = arith.addf %471, %475 : vector<2x32xf32>
    %477 = math.tanh %476 : vector<2x32xf32>
    %cst_68 = arith.constant 1.000000e+00 : f32
    %478 = vector.broadcast %cst_68 : f32 to vector<2x32xf32>
    %479 = arith.subf %478, %470 : vector<2x32xf32>
    %480 = arith.mulf %479, %477 : vector<2x32xf32>
    %481 = arith.mulf %470, %457 : vector<2x32xf32>
    %482 = arith.addf %480, %481 : vector<2x32xf32>
    %483 = vector.extract_strided_slice %306 {offsets = [14, 0], sizes = [2, 128], strides = [1, 1]} : vector<16x128xf32> to vector<2x128xf32>
    %484 = arith.truncf %482 : vector<2x32xf32> to vector<2x32xbf16>
    %cst_69 = arith.constant dense<0.000000e+00> : vector<2x128xf32>
    %485 = tpu.matmul %484, %21, %cst_69 {dimension_numbers = #tpu.dot_dimension_numbers<[1], [0], [0], [1], [0, 0, 1, 1], [], []>} : vector<2x32xbf16>, vector<32x128xbf16>, vector<2x128xf32> -> vector<2x128xf32>
    %486 = vector.extract_strided_slice %483 {offsets = [0, 0], sizes = [2, 64], strides = [1, 1]} : vector<2x128xf32> to vector<2x64xf32>
    %487 = vector.extract_strided_slice %485 {offsets = [0, 0], sizes = [2, 64], strides = [1, 1]} : vector<2x128xf32> to vector<2x64xf32>
    %488 = arith.addf %486, %487 : vector<2x64xf32>
    %489 = arith.negf %488 : vector<2x64xf32>
    %490 = math.exp %489 : vector<2x64xf32>
    %cst_70 = arith.constant 1.000000e+00 : f32
    %491 = vector.broadcast %cst_70 : f32 to vector<2x64xf32>
    %492 = arith.addf %491, %490 : vector<2x64xf32>
    %493 = arith.divf %491, %492 : vector<2x64xf32>
    %494 = vector.extract_strided_slice %493 {offsets = [0, 0], sizes = [2, 32], strides = [1, 1]} : vector<2x64xf32> to vector<2x32xf32>
    %495 = vector.extract_strided_slice %493 {offsets = [0, 32], sizes = [2, 32], strides = [1, 1]} : vector<2x64xf32> to vector<2x32xf32>
    %496 = vector.extract_strided_slice %483 {offsets = [0, 64], sizes = [2, 32], strides = [1, 1]} : vector<2x128xf32> to vector<2x32xf32>
    %497 = vector.extract_strided_slice %485 {offsets = [0, 64], sizes = [2, 32], strides = [1, 1]} : vector<2x128xf32> to vector<2x32xf32>
    %498 = vector.broadcast %9 : vector<1x32xf32> to vector<2x32xf32>
    %499 = arith.addf %497, %498 : vector<2x32xf32>
    %500 = arith.mulf %494, %499 : vector<2x32xf32>
    %501 = arith.addf %496, %500 : vector<2x32xf32>
    %502 = math.tanh %501 : vector<2x32xf32>
    %cst_71 = arith.constant 1.000000e+00 : f32
    %503 = vector.broadcast %cst_71 : f32 to vector<2x32xf32>
    %504 = arith.subf %503, %495 : vector<2x32xf32>
    %505 = arith.mulf %504, %502 : vector<2x32xf32>
    %506 = arith.mulf %495, %482 : vector<2x32xf32>
    %507 = arith.addf %505, %506 : vector<2x32xf32>
    %508 = vector.extract_strided_slice %332 {offsets = [0, 0], sizes = [2, 16], strides = [1, 1]} : vector<2x32xf32> to vector<2x16xf32>
    %509 = vector.extract_strided_slice %507 {offsets = [0, 16], sizes = [2, 16], strides = [1, 1]} : vector<2x32xf32> to vector<2x16xf32>
    %510 = tpu.concatenate %508, %509 in 1 : vector<2x16xf32>, vector<2x16xf32> -> vector<2x32xf32>
    %511 = vector.extract_strided_slice %357 {offsets = [0, 0], sizes = [2, 16], strides = [1, 1]} : vector<2x32xf32> to vector<2x16xf32>
    %512 = vector.extract_strided_slice %482 {offsets = [0, 16], sizes = [2, 16], strides = [1, 1]} : vector<2x32xf32> to vector<2x16xf32>
    %513 = tpu.concatenate %511, %512 in 1 : vector<2x16xf32>, vector<2x16xf32> -> vector<2x32xf32>
    %514 = vector.extract_strided_slice %382 {offsets = [0, 0], sizes = [2, 16], strides = [1, 1]} : vector<2x32xf32> to vector<2x16xf32>
    %515 = vector.extract_strided_slice %457 {offsets = [0, 16], sizes = [2, 16], strides = [1, 1]} : vector<2x32xf32> to vector<2x16xf32>
    %516 = tpu.concatenate %514, %515 in 1 : vector<2x16xf32>, vector<2x16xf32> -> vector<2x32xf32>
    %517 = vector.extract_strided_slice %407 {offsets = [0, 0], sizes = [2, 16], strides = [1, 1]} : vector<2x32xf32> to vector<2x16xf32>
    %518 = vector.extract_strided_slice %432 {offsets = [0, 16], sizes = [2, 16], strides = [1, 1]} : vector<2x32xf32> to vector<2x16xf32>
    %519 = tpu.concatenate %517, %518 in 1 : vector<2x16xf32>, vector<2x16xf32> -> vector<2x32xf32>
    %520 = vector.extract_strided_slice %432 {offsets = [0, 0], sizes = [2, 16], strides = [1, 1]} : vector<2x32xf32> to vector<2x16xf32>
    %521 = vector.extract_strided_slice %407 {offsets = [0, 16], sizes = [2, 16], strides = [1, 1]} : vector<2x32xf32> to vector<2x16xf32>
    %522 = tpu.concatenate %520, %521 in 1 : vector<2x16xf32>, vector<2x16xf32> -> vector<2x32xf32>
    %523 = vector.extract_strided_slice %457 {offsets = [0, 0], sizes = [2, 16], strides = [1, 1]} : vector<2x32xf32> to vector<2x16xf32>
    %524 = vector.extract_strided_slice %382 {offsets = [0, 16], sizes = [2, 16], strides = [1, 1]} : vector<2x32xf32> to vector<2x16xf32>
    %525 = tpu.concatenate %523, %524 in 1 : vector<2x16xf32>, vector<2x16xf32> -> vector<2x32xf32>
    %526 = vector.extract_strided_slice %482 {offsets = [0, 0], sizes = [2, 16], strides = [1, 1]} : vector<2x32xf32> to vector<2x16xf32>
    %527 = vector.extract_strided_slice %357 {offsets = [0, 16], sizes = [2, 16], strides = [1, 1]} : vector<2x32xf32> to vector<2x16xf32>
    %528 = tpu.concatenate %526, %527 in 1 : vector<2x16xf32>, vector<2x16xf32> -> vector<2x32xf32>
    %529 = vector.extract_strided_slice %507 {offsets = [0, 0], sizes = [2, 16], strides = [1, 1]} : vector<2x32xf32> to vector<2x16xf32>
    %530 = vector.extract_strided_slice %332 {offsets = [0, 16], sizes = [2, 16], strides = [1, 1]} : vector<2x32xf32> to vector<2x16xf32>
    %531 = tpu.concatenate %529, %530 in 1 : vector<2x16xf32>, vector<2x16xf32> -> vector<2x32xf32>
    %532 = tpu.concatenate %510, %513, %516, %519, %522, %525, %528, %531 in 0 : vector<2x32xf32>, vector<2x32xf32>, vector<2x32xf32>, vector<2x32xf32>, vector<2x32xf32>, vector<2x32xf32>, vector<2x32xf32>, vector<2x32xf32> -> vector<16x32xf32>
    %c0_72 = arith.constant 0 : index
    %c0_73 = arith.constant 0 : index
    %533 = vector.load %arg3[%c0_72, %c0_73] : memref<16x1xf32, #tpu.memory_space<vmem>>, vector<16x1xf32>
    %534 = vector.broadcast %533 : vector<16x1xf32> to vector<16x32xf32>
    %535 = arith.mulf %532, %534 : vector<16x32xf32>
    %536 = vector.extract_strided_slice %535 {offsets = [0, 0], sizes = [2, 32], strides = [1, 1]} : vector<16x32xf32> to vector<2x32xf32>
    %537 = vector.extract_strided_slice %535 {offsets = [2, 0], sizes = [2, 32], strides = [1, 1]} : vector<16x32xf32> to vector<2x32xf32>
    %538 = arith.addf %536, %537 : vector<2x32xf32>
    %539 = vector.extract_strided_slice %535 {offsets = [4, 0], sizes = [2, 32], strides = [1, 1]} : vector<16x32xf32> to vector<2x32xf32>
    %540 = arith.addf %538, %539 : vector<2x32xf32>
    %541 = vector.extract_strided_slice %535 {offsets = [6, 0], sizes = [2, 32], strides = [1, 1]} : vector<16x32xf32> to vector<2x32xf32>
    %542 = arith.addf %540, %541 : vector<2x32xf32>
    %543 = vector.extract_strided_slice %535 {offsets = [8, 0], sizes = [2, 32], strides = [1, 1]} : vector<16x32xf32> to vector<2x32xf32>
    %544 = arith.addf %542, %543 : vector<2x32xf32>
    %545 = vector.extract_strided_slice %535 {offsets = [10, 0], sizes = [2, 32], strides = [1, 1]} : vector<16x32xf32> to vector<2x32xf32>
    %546 = arith.addf %544, %545 : vector<2x32xf32>
    %547 = vector.extract_strided_slice %535 {offsets = [12, 0], sizes = [2, 32], strides = [1, 1]} : vector<16x32xf32> to vector<2x32xf32>
    %548 = arith.addf %546, %547 : vector<2x32xf32>
    %549 = vector.extract_strided_slice %535 {offsets = [14, 0], sizes = [2, 32], strides = [1, 1]} : vector<16x32xf32> to vector<2x32xf32>
    %550 = arith.addf %548, %549 : vector<2x32xf32>
    %551 = vector.broadcast %11 : vector<1x32xf32> to vector<2x32xf32>
    %552 = arith.mulf %550, %551 : vector<2x32xf32>
    %cst_74 = arith.constant dense<0.000000e+00> : vector<2xf32>
    %553 = vector.multi_reduction <add>, %552, %cst_74 [1] : vector<2x32xf32> to vector<2xf32>
    %554 = vector.shape_cast %553 : vector<2xf32> to vector<2x1xf32>
    %555 = vector.broadcast %13 : vector<1x1xf32> to vector<2x1xf32>
    %556 = arith.addf %554, %555 : vector<2x1xf32>
    %557 = arith.negf %556 : vector<2x1xf32>
    %558 = math.exp %557 : vector<2x1xf32>
    %cst_75 = arith.constant 1.000000e+00 : f32
    %559 = vector.broadcast %cst_75 : f32 to vector<2x1xf32>
    %560 = arith.addf %559, %558 : vector<2x1xf32>
    %561 = arith.divf %559, %560 : vector<2x1xf32>
    %c0_76 = arith.constant 0 : index
    %c0_77 = arith.constant 0 : index
    %562 = vector.load %arg4[%c0_76, %c0_77] : memref<2x1xf32, #tpu.memory_space<vmem>>, vector<2x1xf32>
    tpu.vector_store %arg4[%c0_76, %c0_77], %561 {strides = array<i32>} : memref<2x1xf32, #tpu.memory_space<vmem>>, vector<2x1xf32>,
    return
  }
  func.func @transform_0(%arg0: i32) -> (i32, i32) {
    %c0_i32 = arith.constant 0 : i32
    %c0_i32_0 = arith.constant 0 : i32
    %c0_i32_1 = arith.constant 0 : i32
    return %c0_i32, %c0_i32_0 : i32, i32
  }
  func.func @transform_1(%arg0: i32) -> (i32, i32) {
    %c0_i32 = arith.constant 0 : i32
    %c0_i32_0 = arith.constant 0 : i32
    %c0_i32_1 = arith.constant 0 : i32
    return %c0_i32, %c0_i32_0 : i32, i32
  }
  func.func @transform_2(%arg0: i32) -> (i32, i32) {
    %c0_i32 = arith.constant 0 : i32
    %c0_i32_0 = arith.constant 0 : i32
    %c0_i32_1 = arith.constant 0 : i32
    return %c0_i32, %c0_i32_0 : i32, i32
  }
  func.func @transform_3(%arg0: i32) -> (i32, i32) {
    %c0_i32 = arith.constant 0 : i32
    %c0_i32_0 = arith.constant 0 : i32
    %c0_i32_1 = arith.constant 0 : i32
    return %c0_i32, %c0_i32_0 : i32, i32
  }
}

</mosaic_0001>

<bundles_post_ra>
// kernel: custom_average_model_forward.1
= control target key start
LH: loop header
LB: loop body
LE: loop exit
PB: predicated region body
PF: predicated region fallthrough
CT: control target
= control target key end

     0   :  { %8 = vsyncpa [#allocation3], 0  ;;  %s1779_s15 = smov [#allocation2]   ;;  %s1780_s17 = smov 128   ;;  %s2202_s0 = inlined_call_operand.hbm [shape: f32[224,128], index: 0, kind: input, shape index: {}]   ;;  %s2203_s1 = inlined_call_operand.vmem [shape: s32[16,1], index: 1, kind: input, shape index: {}]   ;;  %s2204_s2 = inlined_call_operand.vmem [shape: f32[16,1], index: 2, kind: input, shape index: {}]   ;;  %s2205_s3 = inlined_call_operand.vmem [shape: f32[2,1], index: 3, kind: output, shape index: {}]  }
   0x1   :  { %s13_s14 = sshll.u32 %s2202_s0, 4  ;;  %s15_s16 = sshll.u32 %s1779_s15, 4  ;;  %s14_s14 = int_to_ptr.hbm [resolvable:$true] %s13_s14  ;;  %s16_s16 = int_to_ptr.vmem [resolvable:$true] %s15_s16 }
   0x2   :  { %s1781_s18 = smov 8  }
   0x3   :  { %21 = dma.hbm_to_vmem [thread:$0]  %s14_s14, 3584, %s16_s16, [#allocation3], %s1780_s17, %s1780_s17, %s1781_s18  }
   0x4   :  { %1777 = dma.done.wait [#allocation3], 3584  }
   0x5   :  { %1778 = vsyncadd [#allocation3], 4294963712  ;;  %v1782_v0 = vmov 0   ;;  %v78_v1 = vld [vmem:[%s2203_s1] sm:$0xff]  ;;  %v77_v2 = vld [vmem:[#allocation2 + $0xd8] sm:$0xff]  ;;  %v80_v6 = vlaneseq  ;;  %vm94_vm0 = vcmask 195584  }
   0x6   :  { %1587 = vset.pattern.permute.xlu0 %v1782_v0  ;;  %1638 = vset.pattern.permute.xlu1 %v1782_v0  ;;  %v79_v3 = vld [vmem:[%s2203_s1 + $0x8] sm:$0xff]  ;;  %v76_v4 = vld [vmem:[#allocation2 + $0xd0] sm:$0xff]  ;;  %v1783_v9 = vmov 0.0   ;;  %vm124_vm3 = vcmask 261120   ;;  %v1784_v17 = vmov 32.0   ;;  %v53_v42 = vld [vmem:[#allocation2 + $0x58] sm:$0xff] }
   0x7   :  { %83 = vperm.xlu0 %1587, %v78_v1   ;;  %114 = vmatpush.msra.mxu0 %v77_v2  ;;  %v75_v5 = vld [vmem:[#allocation2 + $0xc8] sm:$0xff]  ;;  %v81_v7 = vand.u32 127, %v80_v6  ;;  %1647 = vrcp.f32 %v1784_v17  ;;  %v54_v43 = vld [vmem:[#allocation2 + $0x60] sm:$0xff]  ;;  %v52_v46 = vld [vmem:[#allocation2 + $0x50] sm:$0xff]  ;;  %s1785_s1 = smov 64   ;;  %vm192_vm11 = vcmask 1041408  }
   0x8   :  { %v51_v44 = vld [vmem:[#allocation2 + $0x48] sm:$0xff]  ;;  %v1827_v45 = vpack.c.bf16 %v54_v43, %v53_v42  ;;  %v1641_v47 = vld [vmem:[#allocation2 + $0x3] ss:$0 sm:$0xff]  ;;  %v45_v49 = vld [vmem:[#allocation2 + $0x38] sm:$0xff]  ;;  %vm194_vm12 = vcmask 1043456   ;;  %vm196_vm13 = vcmask 1045504  }
   0x9   :  { %115 = vmatpush.msra.mxu0 %v76_v4  ;;  %v46_v50 = vld [vmem:[#allocation2 + $0x40] sm:$0xff]  ;;  %v43_v51 = vld [vmem:[#allocation2 + $0x28] sm:$0xff]  ;;  %v1830_v52 = vpack.c.bf16 %v52_v46, %v51_v44  ;;  %v44_v54 = vld [vmem:[#allocation2 + $0x30] sm:$0xff]  ;;  %s1786_s22 = smov 32   ;;  %vm213_vm14 = vcmask 523264   ;;  %s1787_s23 = smov 96  }
   0xa   :  { %240 = vmatpush.bf16.msra.mxu2 %v1827_v45  ;;  %v50_v53 = vpack.c.bf16 %v46_v50, %v45_v49  ;;  %305 = vmatpush.bf16.msra.mxu3 %v1827_v45  ;;  %v49_v56 = vpack.c.bf16 %v44_v54, %v43_v51  ;;  %v41_v58 = vld [vmem:[#allocation2 + $0x18] sm:$0xff]  ;;  %v42_v59 = vld [vmem:[#allocation2 + $0x20] sm:$0xff] }
   0xb   :  { %116 = vmatpush.msra.mxu0 %v75_v5  ;;  %v1639_v63 = vld [vmem:[#allocation2] ss:$0 sm:$0xff]  ;;  %v48_v1 = vpack.c.bf16 %v42_v59, %v41_v58  ;;  %v1640_v5 = vld [vmem:[#allocation2 + $0x1] ss:$0 sm:$0xff] }
   0xc   :  { %221 = vmatpush.bf16.msra.mxu1 %v50_v53 }
   0xd   :  { %v1648_v18 = vpop.eup %1647  ;;  %373 = vmatpush.bf16.msrb.mxu0 %v1827_v45 }
   0xe   :  { %v132_v19 = vmul.f32 32.0, %v1648_v18  ;;  %vm136_vm4 = vweird.f32 %v1648_v18  ;;  %241 = vmatpush.bf16.msra.mxu2 %v1830_v52  ;;  %306 = vmatpush.bf16.msra.mxu3 %v1830_v52 }
   0xf   :  { %86 = vperm.xlu0 %1587, %v79_v3  }
  0x10   :  { %v133_v20 = vsub.f32 1.0, %v132_v19  ;;  %222 = vmatpush.bf16.msra.mxu1 %v49_v56 }
  0x11   :  { %374 = vmatpush.bf16.msrb.mxu0 %v1830_v52  ;;  %242 = vmatmul.bf16.vlgmr.msra.gmra.mxu2 %v1782_v0 }
  0x12   :  { %v134_v21 = vmul.f32 %v1648_v18, %v133_v20  ;;  %441 = vmatpush.bf16.msrb.mxu2 %v1827_v45  ;;  %509 = vmatpush.bf16.msrb.mxu3 %v1827_v45 }
  0x14   :  { %v135_v22 = vadd.f32 %v1648_v18, %v134_v21  ;;  %223 = vmatpush.bf16.msra.mxu1 %v48_v1 }
  0x16   :  { %v137_v23 = vsel %vm136_vm4, %v1648_v18, %v135_v22  ;;  %442 = vmatpush.bf16.msrb.mxu2 %v1830_v52  ;;  %510 = vmatpush.bf16.msrb.mxu3 %v1830_v52 }
  0x1a   :  { %708 = vmatpush.bf16.msra.mxu2 %v1827_v45 }
  0x1e   :  { %709 = vmatpush.bf16.msra.mxu2 %v1830_v52 }
  0x79   :  { %v84_v8 = vpop.permute.xlu0 %83 }
  0x7a   :  { %vm88_vm1 = vcmp.eq.s32.totalorder %v81_v7, %v84_v8 }
  0x7b   :  { %v1541_v10 = vsel %vm88_vm1, 1.0, %v1783_v9 }
  0x7c   :  { %1543 = vmatmul.msk.f32.vlgmr.msra.gmra.mxu0 %vm94_vm0, %v1541_v10 }
  0x7d   :  { %640 = vmatpush.bf16.msra.mxu0 %v1827_v45 }
  0x81   :  { %v87_v11 = vpop.permute.xlu0 %86  ;;  %641 = vmatpush.bf16.msra.mxu0 %v1830_v52 }
  0x82   :  { %vm89_vm2 = vcmp.eq.s32.totalorder %v81_v7, %v87_v11 }
  0x83   :  { %v1542_v12 = vsel %vm89_vm2, 1.0, %v1783_v9 }
  0x84   :  { %1544 = vmatmul.msk.f32.gmra.mxu0 %vm94_vm0, %v1542_v12 }
  0xf9   :  { %v118_v13 = vpop.f32.mrf.mxu0 }
  0xfa   :  { %v125_v14 = vsel %vm124_vm3, %v118_v13, 0.0 }
  0xfb   :  { %126 = vadd.xlane.f32.xlu1 %v125_v14 }
 0x101   :  { %v121_v15 = vpop.f32.mrf.mxu0 }
 0x102   :  { %v128_v16 = vsel %vm124_vm3, %v121_v15, 0.0 }
 0x103   :  { %129 = vadd.xlane.f32.xlu1 %v128_v16 }
 0x11c   :  { %269 = vrot.lane.b32.xlu1 %v1641_v47, %s1785_s1 }
 0x16e   :  { %v127_v24 = vpop.xlane.xlu1 %126 }
 0x16f   :  { %v138_v25 = vmul.f32 %v137_v23, %v127_v24 }
 0x171   :  { %v140_v26 = vsub.f32 %v118_v13, %v138_v25 }
 0x173   :  { %v142_v27 = vmul.f32 %v140_v26, %v140_v26 }
 0x175   :  { %v144_v28 = vsel %vm124_vm3, %v142_v27, 0.0  ;;  %v40_v27 = vld [vmem:[#allocation2 + $0x10] sm:$0xff] }
 0x176   :  { %145 = vadd.xlane.f32.xlu2 %v144_v28  ;;  %v130_v29 = vpop.xlane.xlu1 %129 }
 0x177   :  { %v139_v30 = vmul.f32 %v137_v23, %v130_v29 }
 0x179   :  { %v1822_v31 = vsub.f32 %v121_v15, %v139_v30  ;;  %v243_v30 = vpop.f32.mrf.mxu2 }
 0x17b   :  { %v143_v32 = vmul.f32 %v1822_v31, %v1822_v31 }
 0x17d   :  { %v147_v33 = vsel %vm124_vm3, %v143_v32, 0.0 }
 0x17e   :  { %148 = vadd.xlane.f32.xlu2 %v147_v33 }
 0x18e   :  { %v1857_v29 = vpop.permute.xlu1 %269 }
 0x1e9   :  { %v146_v34 = vpop.xlane.xlu2 %145 }
 0x1ea   :  { %v150_v35 = vmul.f32 %v146_v34, %v137_v23 }
 0x1ec   :  { %v152_v36 = vadd.f32 1e-05, %v150_v35 }
 0x1ee   :  { %1649 = vrsqrt.f32 %v152_v36  ;;  %vm160_vm6 = vweird.f32 %v152_v36 }
 0x1f1   :  { %v149_v37 = vpop.xlane.xlu2 %148 }
 0x1f2   :  { %v151_v38 = vmul.f32 %v149_v37, %v137_v23  ;;  %v245_v37 = vpop.f32.mrf.mxu2 }
 0x1f4   :  { %v1650_v39 = vpop.eup %1649  ;;  %v153_v40 = vadd.f32 1e-05, %v151_v38 }
 0x1f5   :  { %v155_v41 = vmul.f32 %v1650_v39, %v152_v36  ;;  %vm161_vm5 = vweird.f32 %v1650_v39 }
 0x1f6   :  { %1651 = vrsqrt.f32 %v153_v40  ;;  %vm162_vm7 = vmor %vm160_vm6, %vm161_vm5  ;;  %vm170_vm9 = vweird.f32 %v153_v40 }
 0x1f7   :  { %v156_v48 = vmul.f32 %v1650_v39, %v155_v41 }
 0x1f9   :  { %v157_v55 = vmul.f32 0.5, %v156_v48 }
 0x1fb   :  { %v158_v57 = vsub.f32 1.5, %v157_v55 }
 0x1fc   :  { %v1652_v60 = vpop.eup %1651 }
 0x1fd   :  { %v159_v61 = vmul.f32 %v1650_v39, %v158_v57  ;;  %v165_v62 = vmul.f32 %v1652_v60, %v153_v40  ;;  %vm171_vm8 = vweird.f32 %v1652_v60 }
 0x1fe   :  { %vm172_vm10 = vmor %vm170_vm9, %vm171_vm8 }
 0x1ff   :  { %v163_v2 = vsel %vm162_vm7, %v1650_v39, %v159_v61  ;;  %v166_v3 = vmul.f32 %v1652_v60, %v165_v62  ;;  %v1864_v39 = vld [vmem:[#allocation2 + $0x2] ss:$0 sm:$0xff] }
 0x200   :  { %v174_v4 = vmul.f32 %v163_v2, %v140_v26  ;;  %v39_v26 = vld [vmem:[#allocation2 + $0x8] sm:$0xff] }
 0x201   :  { %v167_v6 = vmul.f32 0.5, %v166_v3  ;;  %v47_v28 = vpack.c.bf16 %v40_v27, %v39_v26 }
 0x202   :  { %v177_v7 = vmul.f32 %v1639_v63, %v174_v4 }
 0x203   :  { %v168_v8 = vsub.f32 1.5, %v167_v6  ;;  %224 = vmatpush.bf16.msra.mxu1 %v47_v28 }
 0x204   :  { %v180_v9 = vadd.f32 %v1640_v5, %v177_v7 }
 0x205   :  { %v169_v10 = vmul.f32 %v1652_v60, %v168_v8 }
 0x206   :  { %v188_v13 = vrot.slane %v180_v9, 6  ;;  %v190_v14 = vrot.slane %v180_v9, 2 }
 0x207   :  { %v173_v11 = vsel %vm172_vm10, %v1652_v60, %v169_v10  ;;  %572 = vmatpush.bf16.msrb.mxu1 %v1827_v45 }
 0x208   :  { %v175_v12 = vmul.f32 %v173_v11, %v1822_v31  ;;  %v198_v17 = vsel %vm192_vm11, %v188_v13, %v190_v14  ;;  %v272_v31 = vadd.f32 %v1857_v29, %v243_v30 }
 0x209   :  { %v199_v20 = vsel %vm194_vm12, %v198_v17, %v188_v13 }
 0x20a   :  { %v178_v15 = vmul.f32 %v1639_v63, %v175_v12  ;;  %v200_v24 = vsel %vm196_vm13, %v199_v20, %v190_v14  ;;  %274 = vrot.lane.b32.xlu2 %v272_v31, %s1785_s1 }
 0x20b   :  { %573 = vmatpush.bf16.msrb.mxu1 %v1830_v52 }
 0x20c   :  { %v181_v16 = vadd.f32 %v1640_v5, %v178_v15 }
 0x20e   :  { %v183_v18 = vrot.slane %v181_v16, 6  ;;  %v185_v19 = vrot.slane %v181_v16, 2 }
 0x210   :  { %v193_v21 = vsel %vm192_vm11, %v183_v18, %v185_v19 }
 0x211   :  { %v195_v22 = vsel %vm194_vm12, %v193_v21, %v183_v18 }
 0x212   :  { %v197_v23 = vsel %vm196_vm13, %v195_v22, %v185_v19 }
 0x213   :  { %v1588_v25 = vpack.i.bf16 %v200_v24, %v197_v23 }
 0x215   :  { %1589 = vrot.lane.b32.xlu0 %v1588_v25, %s1786_s22 }
 0x264   :  { %v275_v53 = vpop.permute.xlu2 %274 }
 0x287   :  { %v1590_v32 = vpop.permute.xlu0 %1589 }
 0x288   :  { %v1592_v33 = vunpack.i.h.bf16 %v1590_v32  ;;  %v1591_v34 = vunpack.i.l.bf16 %v1590_v32 }
 0x28a   :  { %v209_v35 = vsel %vm124_vm3, %v180_v9, %v1591_v34  ;;  %v210_v36 = vsel %vm124_vm3, %v181_v16, %v1592_v33 }
 0x28b   :  { %v211_v38 = vpack.c.bf16 %v210_v36, %v209_v35 }
 0x28d   :  { %1545 = vmatmul.msk.bf16.vlgmr.msra.gmra.mxu1 %vm213_vm14, %v211_v38 }
 0x30a   :  { %v226_v40 = vpop.f32.mrf.mxu1 }
 0x30b   :  { %v1867_v41 = vadd.f32 %v1864_v39, %v226_v40 }
 0x30d   :  { %v247_v42 = vadd.f32 %v243_v30, %v1867_v41 }
 0x30f   :  { %v1546_v43 = vmul.f32 -1.442695, %v247_v42 }
 0x311   :  { %1653 = vpow2.f32 %v1546_v43 }
 0x317   :  { %v1654_v44 = vpop.eup %1653 }
 0x318   :  { %v251_v45 = vadd.f32 1.0, %v1654_v44 }
 0x31a   :  { %1655 = vrcp.f32 %v251_v45  ;;  %v263_v49 = vand.u32 2147483648, %v251_v45  ;;  %v261_v51 = vand.u32 2147483647, %v251_v45  ;;  %vm257_vm0 = vweird.f32 %v251_v45 }
 0x31c   :  { %v264_v54 = vor.u32 1.1754944e-38, %v263_v49  ;;  %vm262_vm2 = vcmp.eq.f32.partialorder %v261_v51, 8.507059e+37 }
 0x320   :  { %v1656_v46 = vpop.eup %1655 }
 0x321   :  { %v253_v47 = vmul.f32 %v1656_v46, %v251_v45  ;;  %vm258_vm15 = vweird.f32 %v1656_v46 }
 0x322   :  { %vm259_vm1 = vmor %vm257_vm0, %vm258_vm15 }
 0x323   :  { %v254_v48 = vsub.f32 1.0, %v253_v47 }
 0x325   :  { %v255_v50 = vmul.f32 %v1656_v46, %v254_v48 }
 0x327   :  { %v256_v52 = vadd.f32 %v1656_v46, %v255_v50 }
 0x329   :  { %v260_v55 = vsel %vm259_vm1, %v1656_v46, %v256_v52 }
 0x32a   :  { %v265_v56 = vsel %vm262_vm2, %v264_v54, %v260_v55 }
 0x32b   :  { %v277_v57 = vmul.f32 %v275_v53, %v265_v56  ;;  %v284_v61 = vsub.f32 1.0, %v265_v56  ;;  %v290_v63 = vmul.f32 0.0, %v265_v56 }
 0x32d   :  { %279 = vrot.lane.b32.xlu0 %v277_v57, %s1785_s1 }
 0x39f   :  { %v280_v58 = vpop.permute.xlu0 %279 }
 0x3a0   :  { %v282_v59 = vadd.f32 %v280_v58, %v1867_v41 }
 0x3a2   :  { %1657 = vtanh.f32 %v282_v59 }
 0x3a8   :  { %v1658_v60 = vpop.eup %1657 }
 0x3a9   :  { %286 = vrot.lane.b32.xlu0 %v1658_v60, %s1787_s23 }
 0x41b   :  { %v287_v62 = vpop.permute.xlu0 %286 }
 0x41c   :  { %v289_v1 = vmul.f32 %v287_v62, %v284_v61 }
 0x41e   :  { %v1873_v2 = vadd.f32 %v290_v63, %v289_v1 }
 0x420   :  { %v292_v3 = vpack.c.bf16 %v1873_v2, %v1873_v2  ;;  %v355_v31 = vrot.slane %v1873_v2, 6 }
 0x422   :  { %294 = vrot.lane.b32.xlu0 %v292_v3, %s1787_s23 }
 0x494   :  { %v295_v4 = vpop.permute.xlu0 %294 }
 0x495   :  { %1547 = vmatmul.msk.bf16.vlgmr.msra.gmra.mxu3 %vm124_vm3, %v295_v4 }
 0x518   :  { %v308_v5 = vpop.f32.mrf.mxu3 }
 0x519   :  { %v335_v6 = vadd.f32 %v308_v5, %v1857_v29  ;;  %v313_v9 = vrot.slane %v308_v5, 6 }
 0x51b   :  { %v337_v7 = vrot.slane %v335_v6, 6  ;;  %v315_v10 = vadd.f32 %v313_v9, %v1867_v41 }
 0x51d   :  { %338 = vrot.lane.b32.xlu2 %v337_v7, %s1785_s1  ;;  %v1548_v11 = vmul.f32 -1.442695, %v315_v10 }
 0x51f   :  { %1659 = vpow2.f32 %v1548_v11 }
 0x520   :  { %v310_v8 = vpop.f32.mrf.mxu3 }
 0x525   :  { %v1660_v12 = vpop.eup %1659 }
 0x526   :  { %v319_v13 = vadd.f32 1.0, %v1660_v12 }
 0x528   :  { %1661 = vrcp.f32 %v319_v13  ;;  %v331_v19 = vand.u32 2147483648, %v319_v13  ;;  %vm325_vm5 = vweird.f32 %v319_v13  ;;  %v329_v20 = vand.u32 2147483647, %v319_v13 }
 0x52a   :  { %v332_v22 = vor.u32 1.1754944e-38, %v331_v19  ;;  %vm330_vm7 = vcmp.eq.f32.partialorder %v329_v20, 8.507059e+37 }
 0x52e   :  { %v1662_v14 = vpop.eup %1661 }
 0x52f   :  { %v321_v15 = vmul.f32 %v1662_v14, %v319_v13  ;;  %vm326_vm4 = vweird.f32 %v1662_v14 }
 0x530   :  { %vm327_vm6 = vmor %vm325_vm5, %vm326_vm4 }
 0x531   :  { %v322_v16 = vsub.f32 1.0, %v321_v15 }
 0x533   :  { %v323_v17 = vmul.f32 %v1662_v14, %v322_v16 }
 0x535   :  { %v324_v18 = vadd.f32 %v1662_v14, %v323_v17 }
 0x537   :  { %v328_v21 = vsel %vm327_vm6, %v1662_v14, %v324_v18 }
 0x538   :  { %v333_v24 = vsel %vm330_vm7, %v332_v22, %v328_v21 }
 0x539   :  { %v348_v30 = vsub.f32 1.0, %v333_v24  ;;  %v357_v33 = vmul.f32 %v355_v31, %v333_v24 }
 0x577   :  { %v339_v23 = vpop.permute.xlu2 %338 }
 0x578   :  { %v341_v25 = vmul.f32 %v339_v23, %v333_v24 }
 0x57a   :  { %343 = vrot.lane.b32.xlu1 %v341_v25, %s1785_s1 }
 0x5ec   :  { %v344_v26 = vpop.permute.xlu1 %343 }
 0x5ed   :  { %v346_v27 = vadd.f32 %v344_v26, %v1867_v41 }
 0x5ef   :  { %1663 = vtanh.f32 %v346_v27 }
 0x5f5   :  { %v1664_v28 = vpop.eup %1663 }
 0x5f6   :  { %350 = vrot.lane.b32.xlu0 %v1664_v28, %s1787_s23 }
 0x668   :  { %v351_v32 = vpop.permute.xlu0 %350 }
 0x669   :  { %v353_v34 = vmul.f32 %v351_v32, %v348_v30 }
 0x66b   :  { %v1886_v35 = vadd.f32 %v357_v33, %v353_v34 }
 0x66d   :  { %v359_v36 = vpack.c.bf16 %v1886_v35, %v1886_v35  ;;  %v423_v4 = vrot.slane %v1886_v35, 6 }
 0x66f   :  { %v361_v37 = vrot.slane %v359_v36, 1 }
 0x671   :  { %362 = vrot.lane.b32.xlu2 %v361_v37, %s1787_s23 }
 0x6cb   :  { %v363_v38 = vpop.permute.xlu2 %362 }
 0x6cc   :  { %1549 = vmatmul.msk.bf16.vlgmr.msrb.gmra.mxu0 %vm124_vm3, %v363_v38 }
 0x749   :  { %v376_v40 = vpop.f32.mrf.mxu0 }
 0x74a   :  { %v403_v42 = vadd.f32 %v376_v40, %v1857_v29  ;;  %v381_v45 = vrot.slane %v376_v40, 4 }
 0x74c   :  { %v405_v43 = vrot.slane %v403_v42, 4  ;;  %v383_v46 = vadd.f32 %v381_v45, %v1867_v41 }
 0x74e   :  { %406 = vrot.lane.b32.xlu1 %v405_v43, %s1785_s1  ;;  %v1550_v47 = vmul.f32 -1.442695, %v383_v46 }
 0x750   :  { %1665 = vpow2.f32 %v1550_v47 }
 0x751   :  { %v378_v44 = vpop.f32.mrf.mxu0 }
 0x756   :  { %v1666_v48 = vpop.eup %1665 }
 0x757   :  { %v387_v49 = vadd.f32 1.0, %v1666_v48 }
 0x759   :  { %1667 = vrcp.f32 %v387_v49  ;;  %v399_v55 = vand.u32 2147483648, %v387_v49  ;;  %vm393_vm9 = vweird.f32 %v387_v49  ;;  %v397_v56 = vand.u32 2147483647, %v387_v49 }
 0x75b   :  { %v400_v58 = vor.u32 1.1754944e-38, %v399_v55  ;;  %vm398_vm15 = vcmp.eq.f32.partialorder %v397_v56, 8.507059e+37 }
 0x75f   :  { %v1668_v50 = vpop.eup %1667 }
 0x760   :  { %v389_v51 = vmul.f32 %v1668_v50, %v387_v49  ;;  %vm394_vm8 = vweird.f32 %v1668_v50 }
 0x761   :  { %vm395_vm10 = vmor %vm393_vm9, %vm394_vm8 }
 0x762   :  { %v390_v52 = vsub.f32 1.0, %v389_v51  ;;  %v228_v51 = vpop.f32.mrf.mxu1 }
 0x764   :  { %v391_v53 = vmul.f32 %v1668_v50, %v390_v52  ;;  %v1923_v52 = vadd.f32 %v1864_v39, %v228_v51 }
 0x766   :  { %v392_v54 = vadd.f32 %v1668_v50, %v391_v53 }
 0x768   :  { %v396_v57 = vsel %vm395_vm10, %v1668_v50, %v392_v54 }
 0x769   :  { %v401_v60 = vsel %vm398_vm15, %v400_v58, %v396_v57 }
 0x76a   :  { %v416_v3 = vsub.f32 1.0, %v401_v60  ;;  %v425_v6 = vmul.f32 %v423_v4, %v401_v60 }
 0x7c0   :  { %v407_v59 = vpop.permute.xlu1 %406 }
 0x7c1   :  { %v409_v61 = vmul.f32 %v407_v59, %v401_v60 }
 0x7c3   :  { %411 = vrot.lane.b32.xlu0 %v409_v61, %s1785_s1 }
 0x835   :  { %v412_v62 = vpop.permute.xlu0 %411 }
 0x836   :  { %v414_v63 = vadd.f32 %v412_v62, %v1867_v41 }
 0x838   :  { %1669 = vtanh.f32 %v414_v63 }
 0x83e   :  { %v1670_v1 = vpop.eup %1669 }
 0x83f   :  { %418 = vrot.lane.b32.xlu2 %v1670_v1, %s1787_s23 }
 0x899   :  { %v419_v5 = vpop.permute.xlu2 %418 }
 0x89a   :  { %v421_v7 = vmul.f32 %v419_v5, %v416_v3 }
 0x89c   :  { %v1901_v8 = vadd.f32 %v425_v6, %v421_v7 }
 0x89e   :  { %v427_v9 = vpack.c.bf16 %v1901_v8, %v1901_v8  ;;  %v491_v40 = vrot.slane %v1901_v8, 6 }
 0x8a0   :  { %v429_v10 = vrot.slane %v427_v9, 2 }
 0x8a2   :  { %430 = vrot.lane.b32.xlu1 %v429_v10, %s1787_s23 }
 0x914   :  { %v431_v11 = vpop.permute.xlu1 %430 }
 0x915   :  { %1551 = vmatmul.msk.bf16.vlgmr.msrb.gmra.mxu2 %vm124_vm3, %v431_v11 }
 0x998   :  { %v444_v12 = vpop.f32.mrf.mxu2 }
 0x999   :  { %v471_v13 = vadd.f32 %v444_v12, %v1857_v29  ;;  %v449_v16 = vrot.slane %v444_v12, 2 }
 0x99b   :  { %v473_v14 = vrot.slane %v471_v13, 2  ;;  %v451_v17 = vadd.f32 %v449_v16, %v1867_v41 }
 0x99d   :  { %474 = vrot.lane.b32.xlu0 %v473_v14, %s1785_s1  ;;  %v1552_v18 = vmul.f32 -1.442695, %v451_v17 }
 0x99f   :  { %1671 = vpow2.f32 %v1552_v18 }
 0x9a0   :  { %v446_v15 = vpop.f32.mrf.mxu2 }
 0x9a5   :  { %v1672_v19 = vpop.eup %1671 }
 0x9a6   :  { %v455_v20 = vadd.f32 1.0, %v1672_v19 }
 0x9a8   :  { %1673 = vrcp.f32 %v455_v20  ;;  %v467_v26 = vand.u32 2147483648, %v455_v20  ;;  %vm461_vm1 = vweird.f32 %v455_v20  ;;  %v465_v27 = vand.u32 2147483647, %v455_v20 }
 0x9aa   :  { %v468_v30 = vor.u32 1.1754944e-38, %v467_v26  ;;  %vm466_vm4 = vcmp.eq.f32.partialorder %v465_v27, 8.507059e+37 }
 0x9ae   :  { %v1674_v21 = vpop.eup %1673 }
 0x9af   :  { %v457_v22 = vmul.f32 %v1674_v21, %v455_v20  ;;  %vm462_vm0 = vweird.f32 %v1674_v21 }
 0x9b0   :  { %vm463_vm2 = vmor %vm461_vm1, %vm462_vm0 }
 0x9b1   :  { %v458_v23 = vsub.f32 1.0, %v457_v22 }
 0x9b3   :  { %v459_v24 = vmul.f32 %v1674_v21, %v458_v23 }
 0x9b5   :  { %v460_v25 = vadd.f32 %v1674_v21, %v459_v24 }
 0x9b7   :  { %v464_v28 = vsel %vm463_vm2, %v1674_v21, %v460_v25 }
 0x9b8   :  { %v469_v32 = vsel %vm466_vm4, %v468_v30, %v464_v28 }
 0x9b9   :  { %v484_v38 = vsub.f32 1.0, %v469_v32  ;;  %v493_v43 = vmul.f32 %v491_v40, %v469_v32 }
 0xa0f   :  { %v475_v31 = vpop.permute.xlu0 %474 }
 0xa10   :  { %v477_v33 = vmul.f32 %v475_v31, %v469_v32 }
 0xa12   :  { %479 = vrot.lane.b32.xlu2 %v477_v33, %s1785_s1 }
 0xa6c   :  { %v480_v34 = vpop.permute.xlu2 %479 }
 0xa6d   :  { %v482_v36 = vadd.f32 %v480_v34, %v1867_v41 }
 0xa6f   :  { %1675 = vtanh.f32 %v482_v36 }
 0xa75   :  { %v1676_v37 = vpop.eup %1675 }
 0xa76   :  { %486 = vrot.lane.b32.xlu1 %v1676_v37, %s1787_s23 }
 0xae8   :  { %v487_v42 = vpop.permute.xlu1 %486 }
 0xae9   :  { %v489_v44 = vmul.f32 %v487_v42, %v484_v38 }
 0xaeb   :  { %v1914_v45 = vadd.f32 %v493_v43, %v489_v44 }
 0xaed   :  { %v495_v46 = vpack.c.bf16 %v1914_v45, %v1914_v45  ;;  %v555_v12 = vrot.slane %v1914_v45, 6 }
 0xaef   :  { %v497_v47 = vrot.slane %v495_v46, 3 }
 0xaf1   :  { %498 = vrot.lane.b32.xlu0 %v497_v47, %s1787_s23 }
 0xb63   :  { %v499_v48 = vpop.permute.xlu0 %498 }
 0xb64   :  { %1553 = vmatmul.msk.bf16.vlgmr.msrb.gmra.mxu3 %vm124_vm3, %v499_v48 }
 0xbe7   :  { %v512_v41 = vpop.f32.mrf.mxu3 }
 0xbe8   :  { %v536_v49 = vadd.f32 %v512_v41, %v1857_v29  ;;  %v516_v53 = vadd.f32 %v512_v41, %v1923_v52 }
 0xbea   :  { %538 = vrot.lane.b32.xlu2 %v536_v49, %s1785_s1  ;;  %v1554_v54 = vmul.f32 -1.442695, %v516_v53 }
 0xbec   :  { %1677 = vpow2.f32 %v1554_v54 }
 0xbef   :  { %v514_v50 = vpop.f32.mrf.mxu3 }
 0xbf2   :  { %v1678_v55 = vpop.eup %1677 }
 0xbf3   :  { %v520_v56 = vadd.f32 1.0, %v1678_v55 }
 0xbf5   :  { %1679 = vrcp.f32 %v520_v56  ;;  %v532_v62 = vand.u32 2147483648, %v520_v56  ;;  %vm526_vm6 = vweird.f32 %v520_v56  ;;  %v530_v63 = vand.u32 2147483647, %v520_v56 }
 0xbf7   :  { %v533_v39 = vor.u32 1.1754944e-38, %v532_v62  ;;  %vm531_vm8 = vcmp.eq.f32.partialorder %v530_v63, 8.507059e+37 }
 0xbfb   :  { %v1680_v57 = vpop.eup %1679 }
 0xbfc   :  { %v522_v58 = vmul.f32 %v1680_v57, %v520_v56  ;;  %vm527_vm5 = vweird.f32 %v1680_v57 }
 0xbfd   :  { %vm528_vm7 = vmor %vm526_vm6, %vm527_vm5 }
 0xbfe   :  { %v523_v59 = vsub.f32 1.0, %v522_v58 }
 0xc00   :  { %v524_v60 = vmul.f32 %v1680_v57, %v523_v59 }
 0xc02   :  { %v525_v61 = vadd.f32 %v1680_v57, %v524_v60 }
 0xc04   :  { %v529_v1 = vsel %vm528_vm7, %v1680_v57, %v525_v61 }
 0xc05   :  { %v534_v5 = vsel %vm531_vm8, %v533_v39, %v529_v1 }
 0xc06   :  { %v548_v11 = vsub.f32 1.0, %v534_v5  ;;  %v557_v14 = vmul.f32 %v555_v12, %v534_v5 }
 0xc44   :  { %v539_v3 = vpop.permute.xlu2 %538 }
 0xc45   :  { %v541_v6 = vmul.f32 %v539_v3, %v534_v5 }
 0xc47   :  { %543 = vrot.lane.b32.xlu1 %v541_v6, %s1785_s1 }
 0xcb9   :  { %v544_v7 = vpop.permute.xlu1 %543 }
 0xcba   :  { %v546_v9 = vadd.f32 %v544_v7, %v1923_v52 }
 0xcbc   :  { %1681 = vtanh.f32 %v546_v9 }
 0xcc2   :  { %v1682_v10 = vpop.eup %1681 }
 0xcc3   :  { %550 = vrot.lane.b32.xlu0 %v1682_v10, %s1787_s23 }
 0xd35   :  { %v551_v13 = vpop.permute.xlu0 %550 }
 0xd36   :  { %v553_v15 = vmul.f32 %v551_v13, %v548_v11 }
 0xd38   :  { %v1932_v16 = vadd.f32 %v557_v14, %v553_v15 }
 0xd3a   :  { %v559_v17 = vpack.c.bf16 %v1932_v16, %v1932_v16  ;;  %v622_v41 = vrot.slane %v1932_v16, 6 }
 0xd3c   :  { %561 = vrot.lane.b32.xlu2 %v559_v17, %s1787_s23 }
 0xd96   :  { %v562_v18 = vpop.permute.xlu2 %561 }
 0xd97   :  { %1555 = vmatmul.msk.bf16.vlgmr.msrb.gmra.mxu1 %vm124_vm3, %v562_v18 }
 0xe14   :  { %v575_v19 = vpop.f32.mrf.mxu1 }
 0xe15   :  { %v602_v20 = vadd.f32 %v575_v19, %v1857_v29  ;;  %v580_v23 = vrot.slane %v575_v19, 6 }
 0xe17   :  { %v604_v21 = vrot.slane %v602_v20, 6  ;;  %v582_v24 = vadd.f32 %v580_v23, %v1923_v52 }
 0xe19   :  { %605 = vrot.lane.b32.xlu1 %v604_v21, %s1785_s1  ;;  %v1556_v25 = vmul.f32 -1.442695, %v582_v24 }
 0xe1b   :  { %1683 = vpow2.f32 %v1556_v25 }
 0xe1c   :  { %v577_v22 = vpop.f32.mrf.mxu1 }
 0xe21   :  { %v1684_v26 = vpop.eup %1683 }
 0xe22   :  { %v586_v27 = vadd.f32 1.0, %v1684_v26 }
 0xe24   :  { %1685 = vrcp.f32 %v586_v27  ;;  %v598_v34 = vand.u32 2147483648, %v586_v27  ;;  %vm592_vm10 = vweird.f32 %v586_v27  ;;  %v596_v36 = vand.u32 2147483647, %v586_v27 }
 0xe26   :  { %v599_v38 = vor.u32 1.1754944e-38, %v598_v34  ;;  %vm597_vm0 = vcmp.eq.f32.partialorder %v596_v36, 8.507059e+37 }
 0xe2a   :  { %v1686_v28 = vpop.eup %1685 }
 0xe2b   :  { %v588_v30 = vmul.f32 %v1686_v28, %v586_v27  ;;  %vm593_vm9 = vweird.f32 %v1686_v28 }
 0xe2c   :  { %vm594_vm15 = vmor %vm592_vm10, %vm593_vm9  ;;  %vm770_vm10 = vcmask 130048  }
 0xe2d   :  { %v589_v31 = vsub.f32 1.0, %v588_v30 }
 0xe2f   :  { %v590_v32 = vmul.f32 %v1686_v28, %v589_v31 }
 0xe31   :  { %v591_v33 = vadd.f32 %v1686_v28, %v590_v32 }
 0xe33   :  { %v595_v37 = vsel %vm594_vm15, %v1686_v28, %v591_v33 }
 0xe34   :  { %v600_v42 = vsel %vm597_vm0, %v599_v38, %v595_v37 }
 0xe35   :  { %v615_v48 = vsub.f32 1.0, %v600_v42  ;;  %v624_v50 = vmul.f32 %v622_v41, %v600_v42 }
 0xe8b   :  { %v606_v40 = vpop.permute.xlu1 %605 }
 0xe8c   :  { %v608_v43 = vmul.f32 %v606_v40, %v600_v42  ;;  %v805_v42 = vrot.slane %v1901_v8, 2 }
 0xe8e   :  { %610 = vrot.lane.b32.xlu0 %v608_v43, %s1785_s1 }
 0xf00   :  { %v611_v44 = vpop.permute.xlu0 %610 }
 0xf01   :  { %v613_v46 = vadd.f32 %v611_v44, %v1923_v52 }
 0xf03   :  { %1687 = vtanh.f32 %v613_v46 }
 0xf09   :  { %v1688_v47 = vpop.eup %1687 }
 0xf0a   :  { %617 = vrot.lane.b32.xlu2 %v1688_v47, %s1787_s23 }
 0xf64   :  { %v618_v49 = vpop.permute.xlu2 %617 }
 0xf65   :  { %v620_v51 = vmul.f32 %v618_v49, %v615_v48 }
 0xf67   :  { %v1945_v53 = vadd.f32 %v624_v50, %v620_v51 }
 0xf69   :  { %v626_v54 = vpack.c.bf16 %v1945_v53, %v1945_v53  ;;  %v690_v23 = vrot.slane %v1945_v53, 6  ;;  %v1603_v43 = vpack.i.bf16 %v805_v42, %v1945_v53 }
 0xf6b   :  { %v628_v55 = vrot.slane %v626_v54, 1 }
 0xf6d   :  { %629 = vrot.lane.b32.xlu1 %v628_v55, %s1787_s23 }
 0xfdf   :  { %v630_v56 = vpop.permute.xlu1 %629 }
 0xfe0   :  { %1557 = vmatmul.msk.bf16.vlgmr.msra.gmra.mxu0 %vm124_vm3, %v630_v56 }
0x105d   :  { %v643_v57 = vpop.f32.mrf.mxu0 }
0x105e   :  { %v670_v58 = vadd.f32 %v643_v57, %v1857_v29  ;;  %v648_v61 = vrot.slane %v643_v57, 4 }
0x1060   :  { %v672_v59 = vrot.slane %v670_v58, 4  ;;  %v650_v62 = vadd.f32 %v648_v61, %v1923_v52 }
0x1062   :  { %673 = vrot.lane.b32.xlu0 %v672_v59, %s1785_s1  ;;  %v1558_v63 = vmul.f32 -1.442695, %v650_v62  ;;  %v1608_v62 = vpack.i.bf16 %v690_v23, %v1901_v8 }
0x1064   :  { %1689 = vpow2.f32 %v1558_v63 }
0x1065   :  { %v645_v60 = vpop.f32.mrf.mxu0 }
0x106a   :  { %v1690_v1 = vpop.eup %1689 }
0x106b   :  { %v654_v39 = vadd.f32 1.0, %v1690_v1 }
0x106d   :  { %1691 = vrcp.f32 %v654_v39  ;;  %v666_v10 = vand.u32 2147483648, %v654_v39  ;;  %vm660_vm2 = vweird.f32 %v654_v39  ;;  %v664_v11 = vand.u32 2147483647, %v654_v39 }
0x106f   :  { %v667_v14 = vor.u32 1.1754944e-38, %v666_v10  ;;  %vm665_vm5 = vcmp.eq.f32.partialorder %v664_v11, 8.507059e+37 }
0x1073   :  { %v1692_v3 = vpop.eup %1691 }
0x1074   :  { %v656_v5 = vmul.f32 %v1692_v3, %v654_v39  ;;  %vm661_vm1 = vweird.f32 %v1692_v3 }
0x1075   :  { %vm662_vm4 = vmor %vm660_vm2, %vm661_vm1 }
0x1076   :  { %v657_v6 = vsub.f32 1.0, %v656_v5 }
0x1078   :  { %v658_v7 = vmul.f32 %v1692_v3, %v657_v6 }
0x107a   :  { %v659_v9 = vadd.f32 %v1692_v3, %v658_v7 }
0x107c   :  { %v663_v13 = vsel %vm662_vm4, %v1692_v3, %v659_v9  ;;  %v1598_v3 = vpack.i.bf16 %v555_v12, %v1932_v16  ;;  %v790_v12 = vrot.slane %v1932_v16, 2 }
0x107d   :  { %v668_v17 = vsel %vm665_vm5, %v667_v14, %v663_v13 }
0x107e   :  { %v683_v22 = vsub.f32 1.0, %v668_v17  ;;  %v692_v25 = vmul.f32 %v690_v23, %v668_v17  ;;  %v64_v23 = vld [vmem:[#allocation2 + $0xa0] sm:$0xff] }
0x10d4   :  { %v674_v15 = vpop.permute.xlu0 %673 }
0x10d5   :  { %v676_v18 = vmul.f32 %v674_v15, %v668_v17  ;;  %v71_v17 = vld [vmem:[#allocation2 + $0xb8] sm:$0xff] }
0x10d7   :  { %678 = vrot.lane.b32.xlu2 %v676_v18, %s1785_s1  ;;  %v72_v18 = vld [vmem:[#allocation2 + $0xc0] sm:$0xff] }
0x1131   :  { %v679_v19 = vpop.permute.xlu2 %678 }
0x1132   :  { %v681_v20 = vadd.f32 %v679_v19, %v1923_v52  ;;  %v69_v19 = vld [vmem:[#allocation2 + $0xa8] sm:$0xff] }
0x1134   :  { %1693 = vtanh.f32 %v681_v20  ;;  %v1989_v20 = vpack.c.bf16 %v72_v18, %v71_v17 }
0x1136   :  { %882 = vmatpush.bf16.msra.mxu1 %v1989_v20  ;;  %947 = vmatpush.bf16.msrb.mxu0 %v1989_v20 }
0x1137   :  { %1015 = vmatpush.bf16.msrb.mxu2 %v1989_v20 }
0x113a   :  { %v1694_v21 = vpop.eup %1693 }
0x113b   :  { %685 = vrot.lane.b32.xlu1 %v1694_v21, %s1787_s23  ;;  %v70_v21 = vld [vmem:[#allocation2 + $0xb0] sm:$0xff] }
0x11ad   :  { %v686_v24 = vpop.permute.xlu1 %685 }
0x11ae   :  { %v688_v26 = vmul.f32 %v686_v24, %v683_v22  ;;  %v1643_v22 = vld [vmem:[#allocation2 + $0x5] ss:$0 sm:$0xff]  ;;  %v61_v24 = vld [vmem:[#allocation2 + $0x88] sm:$0xff] }
0x11b0   :  { %v693_v27 = vadd.f32 %v692_v25, %v688_v26  ;;  %v62_v25 = vld [vmem:[#allocation2 + $0x90] sm:$0xff] }
0x11b2   :  { %v694_v28 = vpack.c.bf16 %v693_v27, %v693_v27  ;;  %v758_v56 = vrot.slane %v693_v27, 6  ;;  %v775_v60 = vrot.slane %v693_v27, 2  ;;  %v1613_v5 = vpack.i.bf16 %v423_v4, %v693_v27 }
0x11b4   :  { %v696_v30 = vrot.slane %v694_v28, 2  ;;  %v1593_v61 = vpack.i.bf16 %v775_v60, %v1886_v35  ;;  %v1623_v35 = vpack.i.bf16 %v790_v12, %v1914_v45  ;;  %v1992_v45 = vpack.c.bf16 %v70_v21, %v69_v19 }
0x11b6   :  { %697 = vrot.lane.b32.xlu0 %v696_v30, %s1787_s23  ;;  %v67_v30 = vpack.c.bf16 %v62_v25, %v61_v24  ;;  %883 = vmatpush.bf16.msra.mxu1 %v1992_v45 }
0x11b7   :  { %948 = vmatpush.bf16.msrb.mxu0 %v1992_v45  ;;  %1016 = vmatpush.bf16.msrb.mxu2 %v1992_v45 }
0x11b9   :  { %884 = vmatmul.bf16.vlgmr.msra.gmra.mxu1 %v1782_v0 }
0x11ba   :  { %1151 = vmatpush.bf16.msrb.mxu1 %v1989_v20 }
0x11bb   :  { %1214 = vmatpush.bf16.msra.mxu0 %v1989_v20 }
0x11be   :  { %1152 = vmatpush.bf16.msrb.mxu1 %v1992_v45 }
0x11bf   :  { %1215 = vmatpush.bf16.msra.mxu0 %v1992_v45 }
0x1228   :  { %v698_v31 = vpop.permute.xlu0 %697 }
0x1229   :  { %1559 = vmatmul.msk.bf16.vlgmr.msra.gmra.mxu2 %vm124_vm3, %v698_v31 }
0x122a   :  { %1282 = vmatpush.bf16.msra.mxu2 %v1989_v20 }
0x122e   :  { %1283 = vmatpush.bf16.msra.mxu2 %v1992_v45 }
0x1236   :  { %v885_v19 = vpop.f32.mrf.mxu1 }
0x12ac   :  { %v711_v32 = vpop.f32.mrf.mxu2 }
0x12ad   :  { %v716_v33 = vrot.slane %v711_v32, 2  ;;  %v738_v34 = vadd.f32 %v711_v32, %v1857_v29  ;;  %v59_v32 = vld [vmem:[#allocation2 + $0x78] sm:$0xff] }
0x12af   :  { %v718_v36 = vadd.f32 %v716_v33, %v1923_v52  ;;  %v740_v37 = vrot.slane %v738_v34, 2  ;;  %v60_v33 = vld [vmem:[#allocation2 + $0x80] sm:$0xff] }
0x12b1   :  { %v1560_v38 = vmul.f32 -1.442695, %v718_v36  ;;  %741 = vrot.lane.b32.xlu2 %v740_v37, %s1785_s1 }
0x12b3   :  { %1695 = vpow2.f32 %v1560_v38 }
0x12b4   :  { %v713_v40 = vpop.f32.mrf.mxu2 }
0x12b9   :  { %v1696_v44 = vpop.eup %1695  ;;  %1604 = vrot.lane.b32.xlu2 %v1603_v43, %s1787_s23  ;;  %v66_v43 = vpack.c.bf16 %v60_v33, %v59_v32 }
0x12ba   :  { %v722_v46 = vadd.f32 1.0, %v1696_v44 }
0x12bc   :  { %1697 = vrcp.f32 %v722_v46  ;;  %v734_v41 = vand.u32 2147483648, %v722_v46  ;;  %v732_v50 = vand.u32 2147483647, %v722_v46  ;;  %vm728_vm7 = vweird.f32 %v722_v46 }
0x12be   :  { %v735_v54 = vor.u32 1.1754944e-38, %v734_v41  ;;  %vm733_vm9 = vcmp.eq.f32.partialorder %v732_v50, 8.507059e+37 }
0x12c2   :  { %v1698_v47 = vpop.eup %1697 }
0x12c3   :  { %v724_v48 = vmul.f32 %v1698_v47, %v722_v46  ;;  %vm729_vm6 = vweird.f32 %v1698_v47 }
0x12c4   :  { %vm730_vm8 = vmor %vm728_vm7, %vm729_vm6 }
0x12c5   :  { %v725_v29 = vsub.f32 1.0, %v724_v48 }
0x12c7   :  { %v726_v49 = vmul.f32 %v1698_v47, %v725_v29 }
0x12c9   :  { %v727_v51 = vadd.f32 %v1698_v47, %v726_v49 }
0x12cb   :  { %v731_v55 = vsel %vm730_vm8, %v1698_v47, %v727_v51 }
0x12cc   :  { %v736_v53 = vsel %vm733_vm9, %v735_v54, %v731_v55 }
0x12cd   :  { %v760_v57 = vmul.f32 %v758_v56, %v736_v53  ;;  %v751_v8 = vsub.f32 1.0, %v736_v53 }
0x130b   :  { %v742_v58 = vpop.permute.xlu2 %741 }
0x130c   :  { %v744_v59 = vmul.f32 %v742_v58, %v736_v53 }
0x130e   :  { %746 = vrot.lane.b32.xlu1 %v744_v59, %s1785_s1 }
0x1313   :  { %v1987_v4 = vpop.permute.xlu2 %1604 }
0x1314   :  { %v1607_v53 = vunpack.i.h.bf16 %v1987_v4 }
0x1316   :  { %1594 = vrot.lane.b32.xlu1 %v1593_v61, %s1787_s23 }
0x131e   :  { %1609 = vrot.lane.b32.xlu1 %v1608_v62, %s1787_s23 }
0x1380   :  { %v747_v63 = vpop.permute.xlu1 %746 }
0x1381   :  { %v749_v1 = vadd.f32 %v747_v63, %v1923_v52  ;;  %v820_v52 = vrot.slane %v1873_v2, 2 }
0x1383   :  { %1699 = vtanh.f32 %v749_v1 }
0x1388   :  { %v1595_v14 = vpop.permute.xlu1 %1594 }
0x1389   :  { %v1700_v39 = vpop.eup %1699  ;;  %v1597_v34 = vunpack.i.h.bf16 %v1595_v14  ;;  %v1596_v36 = vunpack.i.l.bf16 %v1595_v14  ;;  %v57_v14 = vld [vmem:[#allocation2 + $0x68] sm:$0xff] }
0x138a   :  { %753 = vrot.lane.b32.xlu0 %v1700_v39, %s1787_s23 }
0x138b   :  { %v779_v47 = vsel %vm770_vm10, %v1596_v36, %v1597_v34 }
0x1390   :  { %v1610_v37 = vpop.permute.xlu1 %1609 }
0x1391   :  { %v1612_v44 = vunpack.i.h.bf16 %v1610_v37  ;;  %v1611_v46 = vunpack.i.l.bf16 %v1610_v37 }
0x1392   :  { %1599 = vrot.lane.b32.xlu0 %v1598_v3, %s1787_s23 }
0x1393   :  { %v786_v49 = vsel %vm770_vm10, %v1611_v46, %v1612_v44 }
0x139a   :  { %1614 = vrot.lane.b32.xlu0 %v1613_v5, %s1787_s23 }
0x13fc   :  { %v754_v6 = vpop.permute.xlu0 %753 }
0x13fd   :  { %v756_v7 = vmul.f32 %v754_v6, %v751_v8 }
0x13ff   :  { %v761_v9 = vadd.f32 %v760_v57, %v756_v7  ;;  %v1606_v57 = vunpack.i.l.bf16 %v1987_v4 }
0x1401   :  { %v766_v10 = vrot.slane %v761_v9, 6  ;;  %v1628_v11 = vpack.i.bf16 %v820_v52, %v761_v9  ;;  %v809_v63 = vsel %vm770_vm10, %v1606_v57, %v1607_v53 }
0x1403   :  { %1629 = vrot.lane.b32.xlu1 %v1628_v11, %s1787_s23  ;;  %v1618_v13 = vpack.i.bf16 %v766_v10, %v1873_v2  ;;  %v63_v2 = vld [vmem:[#allocation2 + $0x98] sm:$0xff] }
0x1404   :  { %v1600_v16 = vpop.permute.xlu0 %1599  ;;  %v68_v26 = vpack.c.bf16 %v64_v23, %v63_v2 }
0x1405   :  { %1619 = vrot.lane.b32.xlu2 %v1618_v13, %s1787_s23  ;;  %v1602_v50 = vunpack.i.h.bf16 %v1600_v16  ;;  %v1601_v0 = vunpack.i.l.bf16 %v1600_v16 }
0x1406   :  { %866 = vmatpush.bf16.msra.mxu3 %v68_v26 }
0x1407   :  { %v801_v58 = vsel %vm770_vm10, %v1601_v0, %v1602_v50 }
0x1408   :  { %v828_v3 = vsel %vm192_vm11, %v801_v58, %v809_v63 }
0x140a   :  { %867 = vmatpush.bf16.msra.mxu3 %v67_v30 }
0x140c   :  { %v1615_v29 = vpop.permute.xlu0 %1614 }
0x140d   :  { %1624 = vrot.lane.b32.xlu2 %v1623_v35, %s1787_s23  ;;  %v1617_v54 = vunpack.i.h.bf16 %v1615_v29  ;;  %v1616_v55 = vunpack.i.l.bf16 %v1615_v29 }
0x140e   :  { %868 = vmatpush.bf16.msra.mxu3 %v66_v43 }
0x140f   :  { %v816_v61 = vsel %vm770_vm10, %v1616_v55, %v1617_v54 }
0x1410   :  { %v829_v5 = vsel %vm194_vm12, %v828_v3, %v816_v61 }
0x1415   :  { %911 = vrot.lane.b32.xlu2 %v1643_v22, %s1785_s1  ;;  %v887_v22 = vpop.f32.mrf.mxu1 }
0x145f   :  { %v1620_v15 = vpop.permute.xlu2 %1619 }
0x1460   :  { %v1622_v27 = vunpack.i.h.bf16 %v1620_v15  ;;  %v1621_v28 = vunpack.i.l.bf16 %v1620_v15  ;;  %v58_v15 = vld [vmem:[#allocation2 + $0x70] sm:$0xff] }
0x1461   :  { %v65_v17 = vpack.c.bf16 %v58_v15, %v57_v14 }
0x1462   :  { %v771_v38 = vsel %vm770_vm10, %v1621_v28, %v1622_v27  ;;  %v2041_v27 = vld [vmem:[#allocation2 + $0x4] ss:$0 sm:$0xff] }
0x1463   :  { %v825_v48 = vsel %vm192_vm11, %v771_v38, %v779_v47  ;;  %869 = vmatpush.bf16.msra.mxu3 %v65_v17 }
0x1464   :  { %v826_v51 = vsel %vm194_vm12, %v825_v48, %v786_v49 }
0x1467   :  { %v1625_v31 = vpop.permute.xlu2 %1624  ;;  %1083 = vmatpush.bf16.msrb.mxu3 %v1989_v20 }
0x1468   :  { %v1627_v40 = vunpack.i.h.bf16 %v1625_v31  ;;  %v1626_v42 = vunpack.i.l.bf16 %v1625_v31 }
0x146a   :  { %v794_v41 = vsel %vm770_vm10, %v1626_v42, %v1627_v40 }
0x146b   :  { %v827_v56 = vsel %vm196_vm13, %v826_v51, %v794_v41  ;;  %1084 = vmatpush.bf16.msrb.mxu3 %v1992_v45 }
0x146c   :  { %v837_v59 = vrot.slane %v827_v56, 6  ;;  %v839_v60 = vrot.slane %v827_v56, 2 }
0x146e   :  { %v844_v6 = vsel %vm192_vm11, %v837_v59, %v839_v60 }
0x146f   :  { %v845_v10 = vsel %vm194_vm12, %v844_v6, %v837_v59  ;;  %v2032_v18 = vpop.permute.xlu2 %911 }
0x1470   :  { %v846_v35 = vsel %vm196_vm13, %v845_v10, %v839_v60  ;;  %v914_v21 = vadd.f32 %v2032_v18, %v885_v19 }
0x1472   :  { %916 = vrot.lane.b32.xlu1 %v914_v21, %s1785_s1 }
0x1475   :  { %v1630_v62 = vpop.permute.xlu1 %1629 }
0x1476   :  { %v1632_v1 = vunpack.i.h.bf16 %v1630_v62  ;;  %v1631_v39 = vunpack.i.l.bf16 %v1630_v62 }
0x1478   :  { %v824_v8 = vsel %vm770_vm10, %v1631_v39, %v1632_v1 }
0x1479   :  { %v830_v7 = vsel %vm196_vm13, %v829_v5, %v824_v8 }
0x147a   :  { %v832_v9 = vrot.slane %v830_v7, 6  ;;  %v834_v52 = vrot.slane %v830_v7, 2 }
0x147c   :  { %v841_v11 = vsel %vm192_vm11, %v832_v9, %v834_v52 }
0x147d   :  { %v842_v13 = vsel %vm194_vm12, %v841_v11, %v832_v9 }
0x147e   :  { %v843_v12 = vsel %vm196_vm13, %v842_v13, %v834_v52 }
0x147f   :  { %v1633_v4 = vpack.i.bf16 %v846_v35, %v843_v12 }
0x1481   :  { %1634 = vrot.lane.b32.xlu0 %v1633_v4, %s1786_s22 }
0x14e4   :  { %v917_v43 = vpop.permute.xlu1 %916 }
0x14f3   :  { %v1635_v2 = vpop.permute.xlu0 %1634 }
0x14f4   :  { %v1637_v23 = vunpack.i.h.bf16 %v1635_v2  ;;  %v1636_v24 = vunpack.i.l.bf16 %v1635_v2 }
0x14f6   :  { %v856_v25 = vsel %vm124_vm3, %v830_v7, %v1637_v23  ;;  %v855_v16 = vsel %vm124_vm3, %v827_v56, %v1636_v24 }
0x14f7   :  { %v857_v26 = vpack.c.bf16 %v856_v25, %v855_v16 }
0x14f9   :  { %1561 = vmatmul.msk.bf16.vlgmr.msra.gmra.mxu3 %vm213_vm14, %v857_v26 }
0x14fa   :  { %1350 = vmatpush.bf16.msra.mxu3 %v1989_v20 }
0x14fe   :  { %1351 = vmatpush.bf16.msra.mxu3 %v1992_v45 }
0x157c   :  { %v871_v28 = vpop.f32.mrf.mxu3 }
0x157d   :  { %v2044_v30 = vadd.f32 %v2041_v27, %v871_v28 }
0x157f   :  { %v889_v31 = vadd.f32 %v885_v19, %v2044_v30 }
0x1581   :  { %v1562_v32 = vmul.f32 -1.442695, %v889_v31 }
0x1583   :  { %1701 = vpow2.f32 %v1562_v32 }
0x1589   :  { %v1702_v33 = vpop.eup %1701 }
0x158a   :  { %v893_v34 = vadd.f32 1.0, %v1702_v33 }
0x158c   :  { %1703 = vrcp.f32 %v893_v34  ;;  %v905_v40 = vand.u32 2147483648, %v893_v34  ;;  %v903_v45 = vand.u32 2147483647, %v893_v34  ;;  %vm899_vm15 = vweird.f32 %v893_v34 }
0x158e   :  { %v906_v44 = vor.u32 1.1754944e-38, %v905_v40  ;;  %vm904_vm1 = vcmp.eq.f32.partialorder %v903_v45, 8.507059e+37 }
0x1592   :  { %v1704_v36 = vpop.eup %1703 }
0x1593   :  { %v895_v37 = vmul.f32 %v1704_v36, %v893_v34  ;;  %vm900_vm14 = vweird.f32 %v1704_v36 }
0x1594   :  { %vm901_vm0 = vmor %vm899_vm15, %vm900_vm14 }
0x1595   :  { %v896_v38 = vsub.f32 1.0, %v895_v37 }
0x1597   :  { %v897_v20 = vmul.f32 %v1704_v36, %v896_v38 }
0x1599   :  { %v898_v42 = vadd.f32 %v1704_v36, %v897_v20 }
0x159b   :  { %v902_v46 = vsel %vm901_vm0, %v1704_v36, %v898_v42 }
0x159c   :  { %v907_v47 = vsel %vm904_vm1, %v906_v44, %v902_v46 }
0x159d   :  { %v919_v48 = vmul.f32 %v917_v43, %v907_v47  ;;  %v926_v50 = vsub.f32 1.0, %v907_v47  ;;  %v932_v51 = vmul.f32 0.0, %v907_v47 }
0x159f   :  { %921 = vrot.lane.b32.xlu0 %v919_v48, %s1785_s1 }
0x1611   :  { %v922_v29 = vpop.permute.xlu0 %921 }
0x1612   :  { %v924_v41 = vadd.f32 %v922_v29, %v2044_v30 }
0x1614   :  { %1705 = vtanh.f32 %v924_v41 }
0x161a   :  { %v1706_v49 = vpop.eup %1705 }
0x161b   :  { %928 = vrot.lane.b32.xlu2 %v1706_v49, %s1787_s23 }
0x1675   :  { %v929_v0 = vpop.permute.xlu2 %928 }
0x1676   :  { %v931_v54 = vmul.f32 %v929_v0, %v926_v50 }
0x1678   :  { %v2050_v55 = vadd.f32 %v932_v51, %v931_v54 }
0x167a   :  { %v934_v56 = vpack.c.bf16 %v2050_v55, %v2050_v55  ;;  %v997_v19 = vrot.slane %v2050_v55, 6 }
0x167c   :  { %936 = vrot.lane.b32.xlu1 %v934_v56, %s1787_s23 }
0x16ee   :  { %v937_v53 = vpop.permute.xlu1 %936 }
0x16ef   :  { %1563 = vmatmul.msk.bf16.vlgmr.msrb.gmra.mxu0 %vm124_vm3, %v937_v53 }
0x176c   :  { %v950_v57 = vpop.f32.mrf.mxu0 }
0x176d   :  { %v977_v58 = vadd.f32 %v950_v57, %v2032_v18  ;;  %v955_v61 = vrot.slane %v950_v57, 6 }
0x176f   :  { %v979_v59 = vrot.slane %v977_v58, 6  ;;  %v957_v62 = vadd.f32 %v955_v61, %v2044_v30 }
0x1771   :  { %980 = vrot.lane.b32.xlu0 %v979_v59, %s1785_s1  ;;  %v1564_v63 = vmul.f32 -1.442695, %v957_v62 }
0x1773   :  { %1707 = vpow2.f32 %v1564_v63  ;;  %v873_v63 = vpop.f32.mrf.mxu3 }
0x1774   :  { %v952_v60 = vpop.f32.mrf.mxu0 }
0x1779   :  { %v1708_v1 = vpop.eup %1707 }
0x177a   :  { %v961_v39 = vadd.f32 1.0, %v1708_v1 }
0x177c   :  { %1709 = vrcp.f32 %v961_v39  ;;  %v973_v9 = vand.u32 2147483648, %v961_v39  ;;  %vm967_vm4 = vweird.f32 %v961_v39  ;;  %v971_v52 = vand.u32 2147483647, %v961_v39 }
0x177e   :  { %v974_v11 = vor.u32 1.1754944e-38, %v973_v9  ;;  %vm972_vm6 = vcmp.eq.f32.partialorder %v971_v52, 8.507059e+37 }
0x1782   :  { %v1710_v3 = vpop.eup %1709 }
0x1783   :  { %v963_v5 = vmul.f32 %v1710_v3, %v961_v39  ;;  %vm968_vm2 = vweird.f32 %v1710_v3 }
0x1784   :  { %vm969_vm5 = vmor %vm967_vm4, %vm968_vm2 }
0x1785   :  { %v964_v8 = vsub.f32 1.0, %v963_v5 }
0x1787   :  { %v965_v6 = vmul.f32 %v1710_v3, %v964_v8 }
0x1789   :  { %v966_v7 = vadd.f32 %v1710_v3, %v965_v6 }
0x178b   :  { %v970_v10 = vsel %vm969_vm5, %v1710_v3, %v966_v7 }
0x178c   :  { %v975_v12 = vsel %vm972_vm6, %v974_v11, %v970_v10 }
0x178d   :  { %v990_v17 = vsub.f32 1.0, %v975_v12  ;;  %v999_v22 = vmul.f32 %v997_v19, %v975_v12 }
0x17e3   :  { %v981_v13 = vpop.permute.xlu0 %980 }
0x17e4   :  { %v983_v35 = vmul.f32 %v981_v13, %v975_v12 }
0x17e6   :  { %985 = vrot.lane.b32.xlu2 %v983_v35, %s1785_s1 }
0x1840   :  { %v986_v4 = vpop.permute.xlu2 %985 }
0x1841   :  { %v988_v14 = vadd.f32 %v986_v4, %v2044_v30 }
0x1843   :  { %1711 = vtanh.f32 %v988_v14 }
0x1849   :  { %v1712_v15 = vpop.eup %1711 }
0x184a   :  { %992 = vrot.lane.b32.xlu1 %v1712_v15, %s1787_s23 }
0x18bc   :  { %v993_v21 = vpop.permute.xlu1 %992 }
0x18bd   :  { %v995_v2 = vmul.f32 %v993_v21, %v990_v17 }
0x18bf   :  { %v2063_v23 = vadd.f32 %v999_v22, %v995_v2 }
0x18c1   :  { %v1001_v24 = vpack.c.bf16 %v2063_v23, %v2063_v23  ;;  %v1065_v56 = vrot.slane %v2063_v23, 6 }
0x18c3   :  { %v1003_v25 = vrot.slane %v1001_v24, 1 }
0x18c5   :  { %1004 = vrot.lane.b32.xlu0 %v1003_v25, %s1787_s23 }
0x1937   :  { %v1005_v16 = vpop.permute.xlu0 %1004 }
0x1938   :  { %1565 = vmatmul.msk.bf16.vlgmr.msrb.gmra.mxu2 %vm124_vm3, %v1005_v16 }
0x19bb   :  { %v1018_v26 = vpop.f32.mrf.mxu2 }
0x19bc   :  { %v1045_v28 = vadd.f32 %v1018_v26, %v2032_v18  ;;  %v1023_v33 = vrot.slane %v1018_v26, 4 }
0x19be   :  { %v1047_v31 = vrot.slane %v1045_v28, 4  ;;  %v1025_v34 = vadd.f32 %v1023_v33, %v2044_v30 }
0x19c0   :  { %1048 = vrot.lane.b32.xlu2 %v1047_v31, %s1785_s1  ;;  %v1566_v36 = vmul.f32 -1.442695, %v1025_v34 }
0x19c2   :  { %1713 = vpow2.f32 %v1566_v36 }
0x19c3   :  { %v1020_v32 = vpop.f32.mrf.mxu2 }
0x19c8   :  { %v1714_v37 = vpop.eup %1713 }
0x19c9   :  { %v1029_v38 = vadd.f32 1.0, %v1714_v37 }
0x19cb   :  { %1715 = vrcp.f32 %v1029_v38  ;;  %v1041_v44 = vand.u32 2147483648, %v1029_v38  ;;  %vm1035_vm8 = vweird.f32 %v1029_v38  ;;  %v1039_v46 = vand.u32 2147483647, %v1029_v38 }
0x19cd   :  { %v1042_v48 = vor.u32 1.1754944e-38, %v1041_v44  ;;  %vm1040_vm14 = vcmp.eq.f32.partialorder %v1039_v46, 8.507059e+37 }
0x19d1   :  { %v1716_v40 = vpop.eup %1715 }
0x19d2   :  { %v1031_v20 = vmul.f32 %v1716_v40, %v1029_v38  ;;  %vm1036_vm7 = vweird.f32 %v1716_v40 }
0x19d3   :  { %vm1037_vm9 = vmor %vm1035_vm8, %vm1036_vm7 }
0x19d4   :  { %v1032_v45 = vsub.f32 1.0, %v1031_v20  ;;  %v2100_v20 = vadd.f32 %v2041_v27, %v873_v63 }
0x19d6   :  { %v1033_v42 = vmul.f32 %v1716_v40, %v1032_v45 }
0x19d8   :  { %v1034_v43 = vadd.f32 %v1716_v40, %v1033_v42 }
0x19da   :  { %v1038_v47 = vsel %vm1037_vm9, %v1716_v40, %v1034_v43 }
0x19db   :  { %v1043_v41 = vsel %vm1040_vm14, %v1042_v48, %v1038_v47 }
0x19dc   :  { %v1058_v54 = vsub.f32 1.0, %v1043_v41  ;;  %v1067_v57 = vmul.f32 %v1065_v56, %v1043_v41 }
0x1a1a   :  { %v1049_v29 = vpop.permute.xlu2 %1048 }
0x1a1b   :  { %v1051_v49 = vmul.f32 %v1049_v29, %v1043_v41 }
0x1a1d   :  { %1053 = vrot.lane.b32.xlu1 %v1051_v49, %s1785_s1 }
0x1a8f   :  { %v1054_v50 = vpop.permute.xlu1 %1053 }
0x1a90   :  { %v1056_v0 = vadd.f32 %v1054_v50, %v2044_v30 }
0x1a92   :  { %1717 = vtanh.f32 %v1056_v0 }
0x1a98   :  { %v1718_v51 = vpop.eup %1717 }
0x1a99   :  { %1060 = vrot.lane.b32.xlu0 %v1718_v51, %s1787_s23 }
0x1b0b   :  { %v1061_v53 = vpop.permute.xlu0 %1060 }
0x1b0c   :  { %v1063_v58 = vmul.f32 %v1061_v53, %v1058_v54 }
0x1b0e   :  { %v2078_v59 = vadd.f32 %v1067_v57, %v1063_v58 }
0x1b10   :  { %v1069_v60 = vpack.c.bf16 %v2078_v59, %v2078_v59  ;;  %v1133_v26 = vrot.slane %v2078_v59, 6 }
0x1b12   :  { %v1071_v61 = vrot.slane %v1069_v60, 2 }
0x1b14   :  { %1072 = vrot.lane.b32.xlu2 %v1071_v61, %s1787_s23 }
0x1b6e   :  { %v1073_v62 = vpop.permute.xlu2 %1072 }
0x1b6f   :  { %1567 = vmatmul.msk.bf16.vlgmr.msrb.gmra.mxu3 %vm124_vm3, %v1073_v62 }
0x1bf2   :  { %v1086_v1 = vpop.f32.mrf.mxu3 }
0x1bf3   :  { %v1113_v39 = vadd.f32 %v1086_v1, %v2032_v18  ;;  %v1091_v8 = vrot.slane %v1086_v1, 2 }
0x1bf5   :  { %v1115_v3 = vrot.slane %v1113_v39, 2  ;;  %v1093_v6 = vadd.f32 %v1091_v8, %v2044_v30 }
0x1bf7   :  { %1116 = vrot.lane.b32.xlu1 %v1115_v3, %s1785_s1  ;;  %v1568_v7 = vmul.f32 -1.442695, %v1093_v6 }
0x1bf9   :  { %1719 = vpow2.f32 %v1568_v7 }
0x1bfa   :  { %v1088_v5 = vpop.f32.mrf.mxu3 }
0x1bff   :  { %v1720_v9 = vpop.eup %1719 }
0x1c00   :  { %v1097_v52 = vadd.f32 1.0, %v1720_v9 }
0x1c02   :  { %1721 = vrcp.f32 %v1097_v52  ;;  %v1109_v4 = vand.u32 2147483648, %v1097_v52  ;;  %vm1103_vm0 = vweird.f32 %v1097_v52  ;;  %v1107_v14 = vand.u32 2147483647, %v1097_v52 }
0x1c04   :  { %v1110_v17 = vor.u32 1.1754944e-38, %v1109_v4  ;;  %vm1108_vm2 = vcmp.eq.f32.partialorder %v1107_v14, 8.507059e+37 }
0x1c08   :  { %v1722_v10 = vpop.eup %1721 }
0x1c09   :  { %v1099_v11 = vmul.f32 %v1722_v10, %v1097_v52  ;;  %vm1104_vm15 = vweird.f32 %v1722_v10 }
0x1c0a   :  { %vm1105_vm1 = vmor %vm1103_vm0, %vm1104_vm15 }
0x1c0b   :  { %v1100_v13 = vsub.f32 1.0, %v1099_v11 }
0x1c0d   :  { %v1101_v12 = vmul.f32 %v1722_v10, %v1100_v13 }
0x1c0f   :  { %v1102_v35 = vadd.f32 %v1722_v10, %v1101_v12 }
0x1c11   :  { %v1106_v15 = vsel %vm1105_vm1, %v1722_v10, %v1102_v35 }
0x1c12   :  { %v1111_v21 = vsel %vm1108_vm2, %v1110_v17, %v1106_v15 }
0x1c13   :  { %v1126_v16 = vsub.f32 1.0, %v1111_v21  ;;  %v1135_v31 = vmul.f32 %v1133_v26, %v1111_v21 }
0x1c69   :  { %v1117_v19 = vpop.permute.xlu1 %1116 }
0x1c6a   :  { %v1119_v22 = vmul.f32 %v1117_v19, %v1111_v21 }
0x1c6c   :  { %1121 = vrot.lane.b32.xlu0 %v1119_v22, %s1785_s1 }
0x1cde   :  { %v1122_v2 = vpop.permute.xlu0 %1121 }
0x1cdf   :  { %v1124_v24 = vadd.f32 %v1122_v2, %v2044_v30 }
0x1ce1   :  { %1723 = vtanh.f32 %v1124_v24 }
0x1ce7   :  { %v1724_v25 = vpop.eup %1723 }
0x1ce8   :  { %1128 = vrot.lane.b32.xlu2 %v1724_v25, %s1787_s23 }
0x1d42   :  { %v1129_v28 = vpop.permute.xlu2 %1128 }
0x1d43   :  { %v1131_v32 = vmul.f32 %v1129_v28, %v1126_v16 }
0x1d45   :  { %v2091_v33 = vadd.f32 %v1135_v31, %v1131_v32 }
0x1d47   :  { %v1137_v34 = vpack.c.bf16 %v2091_v33, %v2091_v33  ;;  %v1197_v62 = vrot.slane %v2091_v33, 6 }
0x1d49   :  { %v1139_v36 = vrot.slane %v1137_v34, 3 }
0x1d4b   :  { %1140 = vrot.lane.b32.xlu1 %v1139_v36, %s1787_s23 }
0x1dbd   :  { %v1141_v37 = vpop.permute.xlu1 %1140 }
0x1dbe   :  { %1569 = vmatmul.msk.bf16.vlgmr.msrb.gmra.mxu1 %vm124_vm3, %v1141_v37 }
0x1e3b   :  { %v1154_v30 = vpop.f32.mrf.mxu1 }
0x1e3c   :  { %v1178_v38 = vadd.f32 %v1154_v30, %v2032_v18  ;;  %v1158_v45 = vadd.f32 %v1154_v30, %v2100_v20 }
0x1e3e   :  { %1180 = vrot.lane.b32.xlu0 %v1178_v38, %s1785_s1  ;;  %v1570_v42 = vmul.f32 -1.442695, %v1158_v45 }
0x1e40   :  { %1725 = vpow2.f32 %v1570_v42 }
0x1e43   :  { %v1156_v40 = vpop.f32.mrf.mxu1 }
0x1e46   :  { %v1726_v43 = vpop.eup %1725 }
0x1e47   :  { %v1162_v44 = vadd.f32 1.0, %v1726_v43 }
0x1e49   :  { %1727 = vrcp.f32 %v1162_v44  ;;  %v1174_v49 = vand.u32 2147483648, %v1162_v44  ;;  %vm1168_vm5 = vweird.f32 %v1162_v44  ;;  %v1172_v50 = vand.u32 2147483647, %v1162_v44 }
0x1e4b   :  { %v1175_v27 = vor.u32 1.1754944e-38, %v1174_v49  ;;  %vm1173_vm7 = vcmp.eq.f32.partialorder %v1172_v50, 8.507059e+37 }
0x1e4f   :  { %v1728_v46 = vpop.eup %1727 }
0x1e50   :  { %v1164_v47 = vmul.f32 %v1728_v46, %v1162_v44  ;;  %vm1169_vm4 = vweird.f32 %v1728_v46 }
0x1e51   :  { %vm1170_vm6 = vmor %vm1168_vm5, %vm1169_vm4 }
0x1e52   :  { %v1165_v48 = vsub.f32 1.0, %v1164_v47 }
0x1e54   :  { %v1166_v29 = vmul.f32 %v1728_v46, %v1165_v48 }
0x1e56   :  { %v1167_v41 = vadd.f32 %v1728_v46, %v1166_v29 }
0x1e58   :  { %v1171_v0 = vsel %vm1170_vm6, %v1728_v46, %v1167_v41 }
0x1e59   :  { %v1176_v54 = vsel %vm1173_vm7, %v1175_v27, %v1171_v0 }
0x1e5a   :  { %v1190_v61 = vsub.f32 1.0, %v1176_v54  ;;  %v1199_v1 = vmul.f32 %v1197_v62, %v1176_v54 }
0x1eb0   :  { %v1181_v51 = vpop.permute.xlu0 %1180 }
0x1eb1   :  { %v1183_v53 = vmul.f32 %v1181_v51, %v1176_v54 }
0x1eb3   :  { %1185 = vrot.lane.b32.xlu2 %v1183_v53, %s1785_s1 }
0x1f0d   :  { %v1186_v57 = vpop.permute.xlu2 %1185 }
0x1f0e   :  { %v1188_v58 = vadd.f32 %v1186_v57, %v2100_v20 }
0x1f10   :  { %1729 = vtanh.f32 %v1188_v58 }
0x1f16   :  { %v1730_v60 = vpop.eup %1729 }
0x1f17   :  { %1192 = vrot.lane.b32.xlu1 %v1730_v60, %s1787_s23 }
0x1f89   :  { %v1193_v63 = vpop.permute.xlu1 %1192 }
0x1f8a   :  { %v1195_v39 = vmul.f32 %v1193_v63, %v1190_v61 }
0x1f8c   :  { %v2109_v3 = vadd.f32 %v1199_v1, %v1195_v39 }
0x1f8e   :  { %v1201_v5 = vpack.c.bf16 %v2109_v3, %v2109_v3  ;;  %v1264_v36 = vrot.slane %v2109_v3, 6 }
0x1f90   :  { %1203 = vrot.lane.b32.xlu0 %v1201_v5, %s1787_s23 }
0x2002   :  { %v1204_v8 = vpop.permute.xlu0 %1203 }
0x2003   :  { %1571 = vmatmul.msk.bf16.vlgmr.msra.gmra.mxu0 %vm124_vm3, %v1204_v8 }
0x2080   :  { %v1217_v6 = vpop.f32.mrf.mxu0 }
0x2081   :  { %v1244_v7 = vadd.f32 %v1217_v6, %v2032_v18  ;;  %v1222_v10 = vrot.slane %v1217_v6, 6 }
0x2083   :  { %v1246_v9 = vrot.slane %v1244_v7, 6  ;;  %v1224_v11 = vadd.f32 %v1222_v10, %v2100_v20 }
0x2085   :  { %1247 = vrot.lane.b32.xlu2 %v1246_v9, %s1785_s1  ;;  %v1572_v13 = vmul.f32 -1.442695, %v1224_v11 }
0x2087   :  { %1731 = vpow2.f32 %v1572_v13 }
0x2088   :  { %v1219_v52 = vpop.f32.mrf.mxu0 }
0x208d   :  { %v1732_v12 = vpop.eup %1731 }
0x208e   :  { %v1228_v35 = vadd.f32 1.0, %v1732_v12 }
0x2090   :  { %1733 = vrcp.f32 %v1228_v35  ;;  %v1240_v21 = vand.u32 2147483648, %v1228_v35  ;;  %vm1234_vm9 = vweird.f32 %v1228_v35  ;;  %v1238_v22 = vand.u32 2147483647, %v1228_v35 }
0x2092   :  { %v1241_v24 = vor.u32 1.1754944e-38, %v1240_v21  ;;  %vm1239_vm15 = vcmp.eq.f32.partialorder %v1238_v22, 8.507059e+37 }
0x2096   :  { %v1734_v4 = vpop.eup %1733 }
0x2097   :  { %v1230_v14 = vmul.f32 %v1734_v4, %v1228_v35  ;;  %vm1235_vm8 = vweird.f32 %v1734_v4 }
0x2098   :  { %vm1236_vm14 = vmor %vm1234_vm9, %vm1235_vm8 }
0x2099   :  { %v1231_v15 = vsub.f32 1.0, %v1230_v14 }
0x209b   :  { %v1232_v17 = vmul.f32 %v1734_v4, %v1231_v15 }
0x209d   :  { %v1233_v19 = vadd.f32 %v1734_v4, %v1232_v17 }
0x209f   :  { %v1237_v2 = vsel %vm1236_vm14, %v1734_v4, %v1233_v19 }
0x20a0   :  { %v1242_v16 = vsel %vm1239_vm15, %v1241_v24, %v1237_v2  ;;  %v1446_v2 = vrot.slane %v2078_v59, 2 }
0x20a1   :  { %v1257_v34 = vsub.f32 1.0, %v1242_v16  ;;  %v1266_v30 = vmul.f32 %v1264_v36, %v1242_v16 }
0x20df   :  { %v1248_v25 = vpop.permute.xlu2 %1247 }
0x20e0   :  { %v1250_v26 = vmul.f32 %v1248_v25, %v1242_v16 }
0x20e2   :  { %1252 = vrot.lane.b32.xlu1 %v1250_v26, %s1785_s1 }
0x2154   :  { %v1253_v28 = vpop.permute.xlu1 %1252 }
0x2155   :  { %v1255_v31 = vadd.f32 %v1253_v28, %v2100_v20 }
0x2157   :  { %1735 = vtanh.f32 %v1255_v31 }
0x215d   :  { %v1736_v32 = vpop.eup %1735 }
0x215e   :  { %1259 = vrot.lane.b32.xlu0 %v1736_v32, %s1787_s23 }
0x21d0   :  { %v1260_v37 = vpop.permute.xlu0 %1259 }
0x21d1   :  { %v1262_v38 = vmul.f32 %v1260_v37, %v1257_v34 }
0x21d3   :  { %v2122_v40 = vadd.f32 %v1266_v30, %v1262_v38 }
0x21d5   :  { %v1268_v45 = vpack.c.bf16 %v2122_v40, %v2122_v40  ;;  %v1332_v52 = vrot.slane %v2122_v40, 6 }
0x21d7   :  { %v1270_v42 = vrot.slane %v1268_v45, 1 }
0x21d9   :  { %1271 = vrot.lane.b32.xlu2 %v1270_v42, %s1787_s23 }
0x2233   :  { %v1272_v43 = vpop.permute.xlu2 %1271 }
0x2234   :  { %1573 = vmatmul.msk.bf16.vlgmr.msra.gmra.mxu2 %vm124_vm3, %v1272_v43 }
0x22b7   :  { %v1285_v44 = vpop.f32.mrf.mxu2 }
0x22b8   :  { %v1312_v46 = vadd.f32 %v1285_v44, %v2032_v18  ;;  %v1290_v29 = vrot.slane %v1285_v44, 4 }
0x22ba   :  { %v1314_v47 = vrot.slane %v1312_v46, 4  ;;  %v1292_v41 = vadd.f32 %v1290_v29, %v2100_v20  ;;  %v1431_v46 = vrot.slane %v2109_v3, 2 }
0x22bc   :  { %1315 = vrot.lane.b32.xlu1 %v1314_v47, %s1785_s1  ;;  %v1574_v49 = vmul.f32 -1.442695, %v1292_v41 }
0x22be   :  { %1737 = vpow2.f32 %v1574_v49 }
0x22bf   :  { %v1287_v48 = vpop.f32.mrf.mxu2 }
0x22c4   :  { %v1738_v50 = vpop.eup %1737 }
0x22c5   :  { %v1296_v0 = vadd.f32 1.0, %v1738_v50 }
0x22c7   :  { %1739 = vrcp.f32 %v1296_v0  ;;  %v1308_v58 = vand.u32 2147483648, %v1296_v0  ;;  %vm1302_vm1 = vweird.f32 %v1296_v0  ;;  %v1306_v60 = vand.u32 2147483647, %v1296_v0 }
0x22c9   :  { %v1309_v63 = vor.u32 1.1754944e-38, %v1308_v58  ;;  %vm1307_vm4 = vcmp.eq.f32.partialorder %v1306_v60, 8.507059e+37 }
0x22cd   :  { %v1740_v27 = vpop.eup %1739 }
0x22ce   :  { %v1298_v51 = vmul.f32 %v1740_v27, %v1296_v0  ;;  %vm1303_vm0 = vweird.f32 %v1740_v27 }
0x22cf   :  { %vm1304_vm2 = vmor %vm1302_vm1, %vm1303_vm0 }
0x22d0   :  { %v1299_v54 = vsub.f32 1.0, %v1298_v51 }
0x22d2   :  { %v1300_v53 = vmul.f32 %v1740_v27, %v1299_v54 }
0x22d4   :  { %v1301_v57 = vadd.f32 %v1740_v27, %v1300_v53 }
0x22d6   :  { %v1305_v61 = vsel %vm1304_vm2, %v1740_v27, %v1301_v57 }
0x22d7   :  { %v1310_v39 = vsel %vm1307_vm4, %v1309_v63, %v1305_v61 }
0x22d8   :  { %v1325_v9 = vsub.f32 1.0, %v1310_v39  ;;  %v1334_v11 = vmul.f32 %v1332_v52, %v1310_v39 }
0x232e   :  { %v1316_v1 = vpop.permute.xlu1 %1315 }
0x232f   :  { %v1318_v5 = vmul.f32 %v1316_v1, %v1310_v39 }
0x2331   :  { %1320 = vrot.lane.b32.xlu0 %v1318_v5, %s1785_s1 }
0x23a3   :  { %v1321_v8 = vpop.permute.xlu0 %1320 }
0x23a4   :  { %v1323_v6 = vadd.f32 %v1321_v8, %v2100_v20 }
0x23a6   :  { %1741 = vtanh.f32 %v1323_v6 }
0x23ac   :  { %v1742_v7 = vpop.eup %1741 }
0x23ad   :  { %1327 = vrot.lane.b32.xlu2 %v1742_v7, %s1787_s23 }
0x2407   :  { %v1328_v10 = vpop.permute.xlu2 %1327 }
0x2408   :  { %v1330_v13 = vmul.f32 %v1328_v10, %v1325_v9 }
0x240a   :  { %v2135_v12 = vadd.f32 %v1334_v11, %v1330_v13 }
0x240c   :  { %v1336_v35 = vpack.c.bf16 %v2135_v12, %v2135_v12  ;;  %v1416_v22 = vrot.slane %v2135_v12, 2 }
0x240e   :  { %v1338_v4 = vrot.slane %v1336_v35, 2 }
0x2410   :  { %1339 = vrot.lane.b32.xlu1 %v1338_v4, %s1787_s23 }
0x2482   :  { %v1340_v14 = vpop.permute.xlu1 %1339 }
0x2483   :  { %1575 = vmatmul.msk.bf16.vlgmr.msra.gmra.mxu3 %vm124_vm3, %v1340_v14 }
0x2506   :  { %v1353_v15 = vpop.f32.mrf.mxu3 }
0x2507   :  { %v1380_v17 = vadd.f32 %v1353_v15, %v2032_v18  ;;  %v1358_v18 = vrot.slane %v1353_v15, 2 }
0x2509   :  { %v1382_v19 = vrot.slane %v1380_v17, 2  ;;  %v1360_v24 = vadd.f32 %v1358_v18, %v2100_v20 }
0x250b   :  { %1383 = vrot.lane.b32.xlu0 %v1382_v19, %s1785_s1  ;;  %v1576_v25 = vmul.f32 -1.442695, %v1360_v24 }
0x250d   :  { %1743 = vpow2.f32 %v1576_v25 }
0x250e   :  { %v1355_v21 = vpop.f32.mrf.mxu3 }
0x2513   :  { %1404 = vrot.lane.b32.xlu0 %v2050_v55, %s1787_s23  ;;  %v1744_v16 = vpop.eup %1743 }
0x2514   :  { %v1364_v26 = vadd.f32 1.0, %v1744_v16 }
0x2516   :  { %1745 = vrcp.f32 %v1364_v26  ;;  %v1376_v37 = vand.u32 2147483648, %v1364_v26  ;;  %vm1370_vm5 = vweird.f32 %v1364_v26  ;;  %v1374_v30 = vand.u32 2147483647, %v1364_v26 }
0x2518   :  { %v1377_v45 = vor.u32 1.1754944e-38, %v1376_v37  ;;  %vm1375_vm7 = vcmp.eq.f32.partialorder %v1374_v30, 8.507059e+37 }
0x251b   :  { %1417 = vrot.lane.b32.xlu0 %v1416_v22, %s1787_s23 }
0x251c   :  { %v1746_v28 = vpop.eup %1745 }
0x251d   :  { %v1366_v31 = vmul.f32 %v1746_v28, %v1364_v26  ;;  %vm1371_vm3 = vweird.f32 %v1746_v28 }
0x251e   :  { %vm1372_vm6 = vmor %vm1370_vm5, %vm1371_vm3 }
0x251f   :  { %v1367_v32 = vsub.f32 1.0, %v1366_v31 }
0x2521   :  { %v1368_v34 = vmul.f32 %v1746_v28, %v1367_v32 }
0x2523   :  { %1428 = vrot.lane.b32.xlu0 %v2091_v33, %s1787_s23  ;;  %v1369_v36 = vadd.f32 %v1746_v28, %v1368_v34  ;;  %v1473_v33 = vld [vmem:[%s2204_s2 + $0x8] sm:$0xff] }
0x2525   :  { %v1373_v38 = vsel %vm1372_vm6, %v1746_v28, %v1369_v36 }
0x2526   :  { %v1378_v43 = vsel %vm1375_vm7, %v1377_v45, %v1373_v38  ;;  %v1645_v45 = vld [vmem:[#allocation2 + $0x6] ss:$0 sm:$0xff] }
0x252b   :  { %1436 = vrot.lane.b32.xlu0 %v2109_v3, %s1787_s23 }
0x2533   :  { %1447 = vrot.lane.b32.xlu0 %v1446_v2, %s1787_s23 }
0x257d   :  { %v1384_v42 = vpop.permute.xlu0 %1383 }
0x257e   :  { %v1386_v44 = vmul.f32 %v1384_v42, %v1378_v43 }
0x2580   :  { %1388 = vrot.lane.b32.xlu2 %v1386_v44, %s1785_s1 }
0x2588   :  { %1421 = vrot.lane.b32.xlu2 %v2078_v59, %s1787_s23  ;;  %v1472_v59 = vld [vmem:[%s2204_s2] sm:$0xff] }
0x2590   :  { %1432 = vrot.lane.b32.xlu2 %v1431_v46, %s1787_s23  ;;  %v1646_v46 = vld [vmem:[#allocation2 + $0x7] ss:$0 sm:$0xff] }
0x2598   :  { %1439 = vrot.lane.b32.xlu2 %v1197_v62, %s1787_s23  ;;  %v1400_v62 = vrot.slane %v2135_v12, 6 }
0x259a   :  { %v1402_v41 = vmul.f32 %v1400_v62, %v1378_v43 }
0x25da   :  { %v1389_v47 = vpop.permute.xlu2 %1388 }
0x25db   :  { %v1391_v48 = vadd.f32 %v1389_v47, %v2100_v20  ;;  %v1393_v20 = vsub.f32 1.0, %v1378_v43 }
0x25dd   :  { %1747 = vtanh.f32 %v1391_v48 }
0x25e3   :  { %v1748_v29 = vpop.eup %1747 }
0x25e4   :  { %1395 = vrot.lane.b32.xlu1 %v1748_v29, %s1787_s23 }
0x25ec   :  { %1413 = vrot.lane.b32.xlu1 %v2063_v23, %s1787_s23  ;;  %v1461_v23 = vrot.slane %v2050_v55, 2 }
0x25f4   :  { %1424 = vrot.lane.b32.xlu1 %v1332_v52, %s1787_s23 }
0x25fc   :  { %1476 = vperm.xlu1 %1638, %v1472_v59  }
0x2604   :  { %1443 = vrot.lane.b32.xlu1 %v2122_v40, %s1787_s23  ;;  %v1405_v40 = vpop.permute.xlu0 %1404 }
0x260c   :  { %1454 = vrot.lane.b32.xlu1 %v1065_v56, %s1787_s23  ;;  %v1422_v56 = vpop.permute.xlu2 %1421  ;;  %v1418_v54 = vpop.permute.xlu0 %1417 }
0x2614   :  { %1481 = vperm.xlu1 %1638, %v1473_v33   ;;  %v1433_v51 = vpop.permute.xlu2 %1432  ;;  %v1429_v58 = vpop.permute.xlu0 %1428 }
0x2615   :  { %v1435_v6 = vsel %vm770_vm10, %v1429_v58, %v1433_v51 }
0x261c   :  { %v1440_v57 = vpop.permute.xlu2 %1439  ;;  %v1437_v8 = vpop.permute.xlu0 %1436 }
0x261d   :  { %v1442_v17 = vsel %vm770_vm10, %v1437_v8, %v1440_v57 }
0x2624   :  { %v1448_v13 = vpop.permute.xlu0 %1447 }
0x2656   :  { %v1396_v3 = vpop.permute.xlu1 %1395 }
0x2657   :  { %v1398_v49 = vmul.f32 %v1396_v3, %v1393_v20 }
0x2659   :  { %v1403_v50 = vadd.f32 %v1402_v41, %v1398_v49 }
0x265b   :  { %1458 = vrot.lane.b32.xlu0 %v1403_v50, %s1787_s23  ;;  %v1408_v0 = vrot.slane %v1403_v50, 6 }
0x265d   :  { %1409 = vrot.lane.b32.xlu2 %v1408_v0, %s1787_s23 }
0x265e   :  { %v1414_v27 = vpop.permute.xlu1 %1413 }
0x265f   :  { %v1420_v63 = vsel %vm770_vm10, %v1414_v27, %v1418_v54 }
0x2665   :  { %1451 = vrot.lane.b32.xlu2 %v2135_v12, %s1787_s23 }
0x2666   :  { %v1425_v53 = vpop.permute.xlu1 %1424 }
0x2667   :  { %v1427_v39 = vsel %vm770_vm10, %v1422_v56, %v1425_v53 }
0x266d   :  { %1462 = vrot.lane.b32.xlu2 %v1461_v23, %s1787_s23 }
0x266e   :  { %v1477_v60 = vpop.permute.xlu1 %1476 }
0x2676   :  { %v1444_v7 = vpop.permute.xlu1 %1443 }
0x2677   :  { %v1450_v4 = vsel %vm770_vm10, %v1444_v7, %v1448_v13 }
0x2678   :  { %v1469_v21 = vsel %vm192_vm11, %v1442_v17, %v1450_v4 }
0x267e   :  { %v1455_v12 = vpop.permute.xlu1 %1454 }
0x2686   :  { %v1482_v16 = vpop.permute.xlu1 %1481 }
0x26b7   :  { %v1410_v61 = vpop.permute.xlu2 %1409 }
0x26b8   :  { %v1412_v1 = vsel %vm770_vm10, %v1405_v40, %v1410_v61 }
0x26b9   :  { %v1466_v55 = vsel %vm192_vm11, %v1412_v1, %v1420_v63  ;;  %vm1509_vm11 = vcmask 254976  }
0x26ba   :  { %v1467_v5 = vsel %vm194_vm12, %v1466_v55, %v1427_v39 }
0x26bb   :  { %v1468_v9 = vsel %vm196_vm13, %v1467_v5, %v1435_v6 }
0x26bc   :  { %v1484_v52 = vmul.f32 %v1477_v60, %v1468_v9 }
0x26be   :  { %v1487_v11 = vrot.slane %v1484_v52, 2  ;;  %v1490_v14 = vrot.slane %v1484_v52, 4  ;;  %v1493_v25 = vrot.slane %v1484_v52, 6 }
0x26bf   :  { %v1452_v10 = vpop.permute.xlu2 %1451 }
0x26c0   :  { %v1489_v35 = vadd.f32 %v1487_v11, %v1484_v52  ;;  %v1457_v15 = vsel %vm770_vm10, %v1452_v10, %v1455_v12 }
0x26c1   :  { %v1470_v18 = vsel %vm194_vm12, %v1469_v21, %v1457_v15 }
0x26c2   :  { %v1492_v19 = vadd.f32 %v1490_v14, %v1489_v35 }
0x26c4   :  { %v1495_v31 = vadd.f32 %v1493_v25, %v1492_v19 }
0x26c7   :  { %v1463_v22 = vpop.permute.xlu2 %1462 }
0x26cd   :  { %v1459_v2 = vpop.permute.xlu0 %1458 }
0x26ce   :  { %v1465_v24 = vsel %vm770_vm10, %v1459_v2, %v1463_v22  ;;  %vm1534_vm10 = vcmask 1024  }
0x26cf   :  { %v1471_v26 = vsel %vm196_vm13, %v1470_v18, %v1465_v24 }
0x26d0   :  { %v1485_v28 = vmul.f32 %v1482_v16, %v1471_v26 }
0x26d2   :  { %v1496_v32 = vadd.f32 %v1495_v31, %v1485_v28  ;;  %v1498_v34 = vrot.slane %v1485_v28, 2  ;;  %v1501_v37 = vrot.slane %v1485_v28, 4  ;;  %v1504_v38 = vrot.slane %v1485_v28, 6 }
0x26d4   :  { %v1500_v36 = vadd.f32 %v1498_v34, %v1496_v32 }
0x26d6   :  { %v1503_v30 = vadd.f32 %v1501_v37, %v1500_v36 }
0x26d8   :  { %v1506_v42 = vadd.f32 %v1504_v38, %v1503_v30 }
0x26da   :  { %v1508_v43 = vmul.f32 %v1645_v45, %v1506_v42 }
0x26dc   :  { %v1510_v44 = vsel %vm1509_vm11, %v1508_v43, 0.0 }
0x26dd   :  { %1511 = vadd.xlane.f32.xlu0 %v1510_v44 }
0x2750   :  { %v1512_v47 = vpop.xlane.xlu0 %1511 }
0x2751   :  { %v1514_v48 = vadd.f32 %v1646_v46, %v1512_v47 }
0x2753   :  { %v1577_v29 = vmul.f32 -1.442695, %v1514_v48 }
0x2755   :  { %1749 = vpow2.f32 %v1577_v29 }
0x275b   :  { %v1750_v59 = vpop.eup %1749 }
0x275c   :  { %v1518_v33 = vadd.f32 1.0, %v1750_v59 }
0x275e   :  { %1751 = vrcp.f32 %v1518_v33  ;;  %v1530_v41 = vand.u32 2147483648, %v1518_v33  ;;  %v1528_v50 = vand.u32 2147483647, %v1518_v33  ;;  %vm1524_vm13 = vweird.f32 %v1518_v33 }
0x2760   :  { %v1531_v23 = vor.u32 1.1754944e-38, %v1530_v41  ;;  %vm1529_vm9 = vcmp.eq.f32.partialorder %v1528_v50, 8.507059e+37 }
0x2764   :  { %v1752_v20 = vpop.eup %1751 }
0x2765   :  { %v1520_v62 = vmul.f32 %v1752_v20, %v1518_v33  ;;  %vm1525_vm12 = vweird.f32 %v1752_v20 }
0x2766   :  { %vm1526_vm8 = vmor %vm1524_vm13, %vm1525_vm12 }
0x2767   :  { %v1521_v3 = vsub.f32 1.0, %v1520_v62 }
0x2769   :  { %v1522_v49 = vmul.f32 %v1752_v20, %v1521_v3 }
0x276b   :  { %v1523_v0 = vadd.f32 %v1752_v20, %v1522_v49 }
0x276d   :  { %v1527_v56 = vsel %vm1526_vm8, %v1752_v20, %v1523_v0 }
0x276e   :  { %v1532_v40 = vsel %vm1529_vm9, %v1531_v23, %v1527_v56 }
0x276f   :  { %1535 = vst.msk [vmem:[%s2205_s3] sm:$0x3] %vm1534_vm10, %v1532_v40 }
0x2770   :  { %1540 = vsyncpa [#allocation3], 1 }

</bundles_post_ra>
